<compile_context>
chip_gen: v7x
topology: tpu7x:2x2x1
jax: 0.10.0
libtpu: 0.0.40
codegen_flags: <defaults>
</compile_context>

<pallas_src>
import math

import jax
import jax.numpy as jnp
from jax import lax
from jax.experimental import pallas as pl
from jax.experimental.pallas import tpu as pltpu
from jax.scipy.linalg import block_diag

import numpy as np

_GELU_C = 0.7978845608028654  # sqrt(2/pi)
_CHUNK = 8                    # RG-LRU scan chunk (sublane aligned)
_PAD = 8                      # history rows prepended for the causal-conv shifts


def _stable_softplus(x):
    # log(1 + exp(x)) without overflow; only uses ops with direct Mosaic lowerings.
    return jnp.maximum(x, 0.0) + jnp.log(1.0 + jnp.exp(-jnp.abs(x)))


def _gelu_tanh(x):
    return 0.5 * x * (1.0 + jnp.tanh(_GELU_C * (x + 0.044715 * x * x * x)))


def _recurrent_block_kernel(
    x_ref, seg_ref,
    wy_ref, by_ref, wx_ref, bx_ref,
    cw_ref, cb_ref,
    wig_ref, big_ref, wag_ref, bag_ref, ap_ref,
    wo_ref, bo_ref,
    out_ref,
    xps_scr, nbs_scr, a_scr, x_scr, y_scr,
):
    f32 = jnp.float32
    bf16 = jnp.bfloat16

    x_bf = x_ref[...].astype(bf16)                     # (T, W) bf16 MXU operand
    T = x_bf.shape[0]
    L = wy_ref.shape[1]
    K = cw_ref.shape[0]

    # ---- linear_y + tanh-approx GELU (bf16 MXU, f32 accumulate) ----------
    y = _gelu_tanh(jnp.dot(x_bf, wy_ref[...], preferred_element_type=f32) + by_ref[...])

    # ---- linear_x ---------------------------------------------------------
    xp = jnp.dot(x_bf, wx_ref[...], preferred_element_type=f32) + bx_ref[...]

    # ---- causal depthwise Conv1D (temporal width K, doc-boundary masked) --
    # Temporal shifts via a zero/one padded VMEM scratch + static sublane-offset
    # slices (no (T,T) shift matmuls, no (T,L) mask broadcast buffer).
    seg = seg_ref[...]                                 # (T, 1) int32
    nb = (seg != 0).astype(f32)                        # not-a-doc-boundary flags (T, 1)

    xps_scr[pl.ds(0, _PAD), :] = jnp.zeros((_PAD, L), f32)
    xps_scr[pl.ds(_PAD, T), :] = xp
    nbs_scr[pl.ds(0, _PAD), :] = jnp.ones((_PAD, 1), f32)
    nbs_scr[pl.ds(_PAD, T), :] = nb

    conv = cb_ref[...] + xp * cw_ref[pl.ds(K - 1, 1), :]        # tap s = 0
    mask = None                                                  # (T, 1)
    for s in range(1, K):
        j = s - 1                                                # new flag entering the mask
        nb_j = nbs_scr[pl.ds(_PAD - j, T), :]                    # nb[t - j], pad = 1.0
        mask = nb_j if mask is None else mask * nb_j
        shifted = xps_scr[pl.ds(_PAD - s, T), :]                 # xp[t - s], pad = 0.0
        conv = conv + (shifted * mask) * cw_ref[pl.ds(K - 1 - s, 1), :]

    # ---- RG-LRU gates ------------------------------------------------------
    conv_bf = conv.astype(bf16)
    gate_x = jax.nn.sigmoid(
        jnp.dot(conv_bf, wig_ref[...], preferred_element_type=f32) + big_ref[...])
    gate_a = jax.nn.sigmoid(
        jnp.dot(conv_bf, wag_ref[...], preferred_element_type=f32) + bag_ref[...])
    log_a = -8.0 * gate_a * _stable_softplus(ap_ref[...])
    a = jnp.exp(log_a)
    reset = seg == 0                                   # (T, 1) bool
    mult = jnp.where(reset, 1.0, jnp.sqrt(jnp.maximum(1.0 - a * a, 0.0)))

    a_scr[...] = jnp.where(reset, 0.0, a)              # a_eff
    x_scr[...] = conv * gate_x * mult                  # normalized scan input
    y_scr[...] = y

    # ---- chunked RG-LRU scan with fused output projection ------------------
    wo = wo_ref[...]                                   # (L, W) bf16
    bo = bo_ref[...]                                   # (1, W) f32
    row_iota = lax.broadcasted_iota(jnp.int32, (_CHUNK, 1), 0)

    def chunk_body(c, h):                              # h: (1, L) carried hidden state
        base = pl.multiple_of(c * _CHUNK, _CHUNK)
        y_c = y_scr[pl.ds(base, _CHUNK), :]
        lru_c = jnp.zeros((_CHUNK, L), f32)
        for r in range(_CHUNK):                        # unrolled serial recurrence
            a_r = a_scr[pl.ds(base + r, 1), :]
            x_r = x_scr[pl.ds(base + r, 1), :]
            h = a_r * h + x_r
            lru_c = jnp.where(row_iota == r, h, lru_c)
        out_pre = (lru_c * y_c).astype(bf16)
        out_c = jnp.dot(out_pre, wo, preferred_element_type=f32) + bo
        out_ref[pl.ds(base, _CHUNK), :] = out_c.astype(out_ref.dtype)
        return h

    lax.fori_loop(0, T // _CHUNK, chunk_body, jnp.zeros((1, L), f32))


def recurrent_block_forward(x, segment_pos, p):
    B, T, W = x.shape
    L = p["wy"].shape[1]
    K = p["cw"].shape[0]
    assert T % _CHUNK == 0, "T must be a multiple of the scan chunk (8)"
    assert K - 1 <= _PAD
    seg3 = segment_pos.astype(jnp.int32).reshape(B, T, 1)

    def full_spec(arr):
        nd = arr.ndim
        return pl.BlockSpec(arr.shape, lambda b, _nd=nd: (0,) * _nd)

    in_specs = [
        pl.BlockSpec((None, T, W), lambda b: (b, 0, 0)),   # x
        pl.BlockSpec((None, T, 1), lambda b: (b, 0, 0)),   # segment_pos
        full_spec(p["wy"]), full_spec(p["by"]),
        full_spec(p["wx"]), full_spec(p["bx"]),
        full_spec(p["cw"]), full_spec(p["cb"]),
        full_spec(p["wig"]), full_spec(p["big"]),
        full_spec(p["wag"]), full_spec(p["bag"]),
        full_spec(p["a_param"]),
        full_spec(p["wout"]), full_spec(p["bout"]),
    ]

    return pl.pallas_call(
        _recurrent_block_kernel,
        out_shape=jax.ShapeDtypeStruct((B, T, W), x.dtype),
        grid=(B,),
        in_specs=in_specs,
        out_specs=pl.BlockSpec((None, T, W), lambda b: (b, 0, 0)),
        scratch_shapes=[
            pltpu.VMEM((T + _PAD, L), jnp.float32),   # zero-padded x_proj (conv shifts)
            pltpu.VMEM((T + _PAD, 1), jnp.float32),   # one-padded not-boundary flags
            pltpu.VMEM((T, L), jnp.float32),          # a_eff
            pltpu.VMEM((T, L), jnp.float32),          # normalized scan input
            pltpu.VMEM((T, L), jnp.float32),          # gelu(linear_y(x))
        ],
        compiler_params=pltpu.CompilerParams(
            dimension_semantics=("parallel",),
            vmem_limit_bytes=48 * 1024 * 1024,        # above v5e/v6e defaults, below v7x physical
        ),
    )(x, seg3,
      p["wy"], p["by"], p["wx"], p["bx"],
      p["cw"], p["cb"],
      p["wig"], p["big"], p["wag"], p["bag"], p["a_param"],
      p["wout"], p["bout"])


def init_params(key, width, lru_width, num_heads, conv_width,
                final_w_init_variance_scale=1.0):
    assert lru_width % num_heads == 0
    bw = lru_width // num_heads
    ks = jax.random.split(key, 7)
    p = {}
    # dense linears, stored pre-transposed as (in, out), bf16 for the MXU
    p["wy"] = (jax.random.normal(ks[0], (width, lru_width), jnp.float32)
               * math.sqrt(1.0 / width)).astype(jnp.bfloat16)
    p["by"] = jnp.zeros((1, lru_width), jnp.float32)
    p["wx"] = (jax.random.normal(ks[1], (width, lru_width), jnp.float32)
               * math.sqrt(1.0 / width)).astype(jnp.bfloat16)
    p["bx"] = jnp.zeros((1, lru_width), jnp.float32)
    p["wout"] = (jax.random.normal(ks[2], (lru_width, width), jnp.float32)
                 * math.sqrt(final_w_init_variance_scale / lru_width)).astype(jnp.bfloat16)
    p["bout"] = jnp.zeros((1, width), jnp.float32)
    # Conv1D: per-channel temporal weights (K, lru_width) + bias, kept f32 (VPU only)
    p["cw"] = jax.random.normal(ks[3], (conv_width, lru_width), jnp.float32) * math.sqrt(
        0.01 / conv_width)
    p["cb"] = jnp.zeros((1, lru_width), jnp.float32)
    # RG-LRU block-diagonal gates, materialized dense (lru_width, lru_width), bf16
    wig_blocks = jax.random.normal(ks[4], (num_heads, bw, bw), jnp.float32) * math.sqrt(1.0 / bw)
    wag_blocks = jax.random.normal(ks[5], (num_heads, bw, bw), jnp.float32) * math.sqrt(1.0 / bw)
    p["wig"] = block_diag(*[wig_blocks[h] for h in range(num_heads)]).astype(jnp.bfloat16)
    p["wag"] = block_diag(*[wag_blocks[h] for h in range(num_heads)]).astype(jnp.bfloat16)
    p["big"] = jnp.zeros((1, lru_width), jnp.float32)
    p["bag"] = jnp.zeros((1, lru_width), jnp.float32)
    # a_param via rnn_param_init(min_rad=0.9, max_rad=0.999, transform="softplus")
    u = jax.random.uniform(ks[6], (lru_width,), jnp.float32,
                           minval=0.9 ** 2 + 1e-8, maxval=0.999 ** 2 + 1e-8)
    p["a_param"] = jnp.log(jnp.exp(-0.5 * jnp.log(u)) - 1.0).reshape(1, lru_width)
    return p


def reference_forward(x, segment_pos, p):
    """Plain-JAX reference of the same forward pass (same bf16 MXU operands)."""
    f32, bf16 = jnp.float32, jnp.bfloat16
    B, T, W = x.shape
    K = p["cw"].shape[0]
    x_bf = x.astype(bf16)
    y = jnp.einsum("btw,wl->btl", x_bf, p["wy"], preferred_element_type=f32) + p["by"]
    y = _gelu_tanh(y)
    xp = jnp.einsum("btw,wl->btl", x_bf, p["wx"], preferred_element_type=f32) + p["bx"]

    nb = (segment_pos != 0).astype(f32)                 # (B, T)
    conv = p["cb"] + xp * p["cw"][K - 1][None, None, :]
    mask = jnp.ones((B, T), f32)
    for s in range(1, K):
        j = s - 1
        nb_j = jnp.pad(nb, ((0, 0), (j, 0)), constant_values=1.0)[:, :T]
        mask = mask * nb_j
        shifted = jnp.pad(xp, ((0, 0), (s, 0), (0, 0)))[:, :T]
        conv = conv + shifted * mask[..., None] * p["cw"][K - 1 - s][None, None, :]

    conv_bf = conv.astype(bf16)
    gate_x = jax.nn.sigmoid(
        jnp.einsum("btl,lk->btk", conv_bf, p["wig"], preferred_element_type=f32) + p["big"])
    gate_a = jax.nn.sigmoid(
        jnp.einsum("btl,lk->btk", conv_bf, p["wag"], preferred_element_type=f32) + p["bag"])
    log_a = -8.0 * gate_a * _stable_softplus(p["a_param"])
    a = jnp.exp(log_a)
    mult = jnp.sqrt(jnp.maximum(1.0 - a * a, 0.0))
    reset = (segment_pos == 0)[..., None]
    mult = jnp.where(reset, 1.0, mult)
    normed = conv * gate_x * mult
    a_eff = jnp.where(reset, 0.0, a)

    h = jnp.zeros((B, a.shape[-1]), f32)
    outs = []
    for t in range(T):
        h = a_eff[:, t] * h + normed[:, t]
        outs.append(h)
    lru = jnp.stack(outs, axis=1)
    out_pre = (lru * y).astype(bf16)
    return jnp.einsum("btl,lw->btw", out_pre, p["wout"], preferred_element_type=f32) + p["bout"]


if __name__ == "__main__":
    B, T = 2, 16
    width, num_heads, lru_width, conv_width = 32, 4, 32, 4

    key = jax.random.PRNGKey(0)
    kx, kp = jax.random.split(key)
    x = jax.random.normal(kx, (B, T, width), jnp.float32)
    # second batch row restarts a document at t=5 to exercise the conv/scan reset path
    pos0 = jnp.arange(T, dtype=jnp.int32)
    pos1 = jnp.concatenate([jnp.arange(5, dtype=jnp.int32),
                            jnp.arange(T - 5, dtype=jnp.int32)])
    segment_pos = jnp.stack([pos0, pos1], axis=0)
    params = init_params(kp, width, lru_width, num_heads, conv_width)

    out = recurrent_block_forward(x, segment_pos, params)
    out = jax.block_until_ready(out)

    ref = reference_forward(x, segment_pos, params)
    np.testing.assert_allclose(np.asarray(out), np.asarray(ref), rtol=2e-3, atol=2e-3)

    print("KERNEL_OK")
</pallas_src>

<mosaic_0001>
module attributes {stable_mosaic.version = 11 : i64} {
  func.func @_recurrent_block_kernel(%arg0: i32, %arg1: memref<1x16x32xf32, #tpu.memory_space<vmem>>, %arg2: memref<1x16x1xi32, #tpu.memory_space<vmem>>, %arg3: memref<32x32xbf16, #tpu.memory_space<vmem>>, %arg4: memref<1x32xf32, #tpu.memory_space<vmem>>, %arg5: memref<32x32xbf16, #tpu.memory_space<vmem>>, %arg6: memref<1x32xf32, #tpu.memory_space<vmem>>, %arg7: memref<4x32xf32, #tpu.memory_space<vmem>>, %arg8: memref<1x32xf32, #tpu.memory_space<vmem>>, %arg9: memref<32x32xbf16, #tpu.memory_space<vmem>>, %arg10: memref<1x32xf32, #tpu.memory_space<vmem>>, %arg11: memref<32x32xbf16, #tpu.memory_space<vmem>>, %arg12: memref<1x32xf32, #tpu.memory_space<vmem>>, %arg13: memref<1x32xf32, #tpu.memory_space<vmem>>, %arg14: memref<32x32xbf16, #tpu.memory_space<vmem>>, %arg15: memref<1x32xf32, #tpu.memory_space<vmem>>, %arg16: memref<1x16x32xf32, #tpu.memory_space<vmem>>, %arg17: memref<24x32xf32, #tpu.memory_space<vmem>>, %arg18: memref<24x1xf32, #tpu.memory_space<vmem>>, %arg19: memref<16x32xf32, #tpu.memory_space<vmem>>, %arg20: memref<16x32xf32, #tpu.memory_space<vmem>>, %arg21: memref<16x32xf32, #tpu.memory_space<vmem>>) attributes {dimension_semantics = [#tpu.dimension_semantics<parallel>], iteration_bounds = array<i64: 2>, scalar_prefetch = 0 : i64, scratch_operands = 5 : i64, tpu.core_type = #tpu.core_type<tc>, window_params = [{transform_indices = @transform_0, window_bounds = array<i64: 1, 16, 32>}, {transform_indices = @transform_1, window_bounds = array<i64: 1, 16, 1>}, {pipeline_mode = #tpu.pipeline_mode<synchronous>, transform_indices = @transform_2, window_bounds = array<i64: 32, 32>}, {pipeline_mode = #tpu.pipeline_mode<synchronous>, transform_indices = @transform_3, window_bounds = array<i64: 1, 32>}, {pipeline_mode = #tpu.pipeline_mode<synchronous>, transform_indices = @transform_4, window_bounds = array<i64: 32, 32>}, {pipeline_mode = #tpu.pipeline_mode<synchronous>, transform_indices = @transform_5, window_bounds = array<i64: 1, 32>}, {pipeline_mode = #tpu.pipeline_mode<synchronous>, transform_indices = @transform_6, window_bounds = array<i64: 4, 32>}, {pipeline_mode = #tpu.pipeline_mode<synchronous>, transform_indices = @transform_7, window_bounds = array<i64: 1, 32>}, {pipeline_mode = #tpu.pipeline_mode<synchronous>, transform_indices = @transform_8, window_bounds = array<i64: 32, 32>}, {pipeline_mode = #tpu.pipeline_mode<synchronous>, transform_indices = @transform_9, window_bounds = array<i64: 1, 32>}, {pipeline_mode = #tpu.pipeline_mode<synchronous>, transform_indices = @transform_10, window_bounds = array<i64: 32, 32>}, {pipeline_mode = #tpu.pipeline_mode<synchronous>, transform_indices = @transform_11, window_bounds = array<i64: 1, 32>}, {pipeline_mode = #tpu.pipeline_mode<synchronous>, transform_indices = @transform_12, window_bounds = array<i64: 1, 32>}, {pipeline_mode = #tpu.pipeline_mode<synchronous>, transform_indices = @transform_13, window_bounds = array<i64: 32, 32>}, {pipeline_mode = #tpu.pipeline_mode<synchronous>, transform_indices = @transform_14, window_bounds = array<i64: 1, 32>}, {transform_indices = @transform_15, window_bounds = array<i64: 1, 16, 32>}]} {
    %c0 = arith.constant 0 : index
    %c0_0 = arith.constant 0 : index
    %c0_1 = arith.constant 0 : index
    %0 = vector.load %arg1[%c0, %c0_0, %c0_1] : memref<1x16x32xf32, #tpu.memory_space<vmem>>, vector<1x16x32xf32>
    %1 = vector.shape_cast %0 : vector<1x16x32xf32> to vector<16x32xf32>
    %2 = arith.truncf %1 : vector<16x32xf32> to vector<16x32xbf16>
    %c0_2 = arith.constant 0 : index
    %c0_3 = arith.constant 0 : index
    %3 = vector.load %arg3[%c0_2, %c0_3] : memref<32x32xbf16, #tpu.memory_space<vmem>>, vector<32x32xbf16>
    %cst = arith.constant dense<0.000000e+00> : vector<16x32xf32>
    %4 = tpu.matmul %2, %3, %cst {dimension_numbers = #tpu.dot_dimension_numbers<[1], [0], [0], [1], [0, 0, 1, 1], [], []>} : vector<16x32xbf16>, vector<32x32xbf16>, vector<16x32xf32> -> vector<16x32xf32>
    %c0_4 = arith.constant 0 : index
    %c0_5 = arith.constant 0 : index
    %5 = vector.load %arg4[%c0_4, %c0_5] : memref<1x32xf32, #tpu.memory_space<vmem>>, vector<1x32xf32>
    %6 = vector.broadcast %5 : vector<1x32xf32> to vector<16x32xf32>
    %7 = arith.addf %4, %6 : vector<16x32xf32>
    %cst_6 = arith.constant 5.000000e-01 : f32
    %8 = vector.broadcast %cst_6 : f32 to vector<16x32xf32>
    %9 = arith.mulf %8, %7 : vector<16x32xf32>
    %cst_7 = arith.constant 4.471500e-02 : f32
    %10 = vector.broadcast %cst_7 : f32 to vector<16x32xf32>
    %11 = arith.mulf %10, %7 : vector<16x32xf32>
    %12 = arith.mulf %11, %7 : vector<16x32xf32>
    %13 = arith.mulf %12, %7 : vector<16x32xf32>
    %14 = arith.addf %7, %13 : vector<16x32xf32>
    %cst_8 = arith.constant 0.797884583 : f32
    %15 = vector.broadcast %cst_8 : f32 to vector<16x32xf32>
    %16 = arith.mulf %15, %14 : vector<16x32xf32>
    %17 = math.tanh %16 : vector<16x32xf32>
    %cst_9 = arith.constant 1.000000e+00 : f32
    %18 = vector.broadcast %cst_9 : f32 to vector<16x32xf32>
    %19 = arith.addf %18, %17 : vector<16x32xf32>
    %20 = arith.mulf %9, %19 : vector<16x32xf32>
    %c0_10 = arith.constant 0 : index
    %c0_11 = arith.constant 0 : index
    %21 = vector.load %arg5[%c0_10, %c0_11] : memref<32x32xbf16, #tpu.memory_space<vmem>>, vector<32x32xbf16>
    %cst_12 = arith.constant dense<0.000000e+00> : vector<16x32xf32>
    %22 = tpu.matmul %2, %21, %cst_12 {dimension_numbers = #tpu.dot_dimension_numbers<[1], [0], [0], [1], [0, 0, 1, 1], [], []>} : vector<16x32xbf16>, vector<32x32xbf16>, vector<16x32xf32> -> vector<16x32xf32>
    %c0_13 = arith.constant 0 : index
    %c0_14 = arith.constant 0 : index
    %23 = vector.load %arg6[%c0_13, %c0_14] : memref<1x32xf32, #tpu.memory_space<vmem>>, vector<1x32xf32>
    %24 = vector.broadcast %23 : vector<1x32xf32> to vector<16x32xf32>
    %25 = arith.addf %22, %24 : vector<16x32xf32>
    %c0_15 = arith.constant 0 : index
    %c0_16 = arith.constant 0 : index
    %c0_17 = arith.constant 0 : index
    %26 = vector.load %arg2[%c0_15, %c0_16, %c0_17] : memref<1x16x1xi32, #tpu.memory_space<vmem>>, vector<1x16x1xi32>
    %27 = vector.shape_cast %26 : vector<1x16x1xi32> to vector<16x1xi32>
    %c0_i32 = arith.constant 0 : i32
    %28 = vector.broadcast %c0_i32 : i32 to vector<16x1xi32>
    %29 = arith.cmpi ne, %27, %28 : vector<16x1xi32>
    %30 = arith.extui %29 : vector<16x1xi1> to vector<16x1xi32>
    %31 = arith.sitofp %30 : vector<16x1xi32> to vector<16x1xf32>
    %cst_18 = arith.constant 0.000000e+00 : f32
    %32 = vector.broadcast %cst_18 : f32 to vector<8x32xf32>
    %c0_19 = arith.constant 0 : index
    %c0_20 = arith.constant 0 : index
    %33 = vector.load %arg17[%c0_19, %c0_20] : memref<24x32xf32, #tpu.memory_space<vmem>>, vector<8x32xf32>
    tpu.vector_store %arg17[%c0_19, %c0_20], %32 {strides = array<i32>} : memref<24x32xf32, #tpu.memory_space<vmem>>, vector<8x32xf32>,
    %c8 = arith.constant 8 : index
    %c0_21 = arith.constant 0 : index
    %34 = vector.load %arg17[%c8, %c0_21] : memref<24x32xf32, #tpu.memory_space<vmem>>, vector<16x32xf32>
    tpu.vector_store %arg17[%c8, %c0_21], %25 {strides = array<i32>} : memref<24x32xf32, #tpu.memory_space<vmem>>, vector<16x32xf32>,
    %cst_22 = arith.constant 1.000000e+00 : f32
    %35 = vector.broadcast %cst_22 : f32 to vector<8x1xf32>
    %c0_23 = arith.constant 0 : index
    %c0_24 = arith.constant 0 : index
    %36 = vector.load %arg18[%c0_23, %c0_24] : memref<24x1xf32, #tpu.memory_space<vmem>>, vector<8x1xf32>
    tpu.vector_store %arg18[%c0_23, %c0_24], %35 {strides = array<i32>} : memref<24x1xf32, #tpu.memory_space<vmem>>, vector<8x1xf32>,
    %c8_25 = arith.constant 8 : index
    %c0_26 = arith.constant 0 : index
    %37 = vector.load %arg18[%c8_25, %c0_26] : memref<24x1xf32, #tpu.memory_space<vmem>>, vector<16x1xf32>
    tpu.vector_store %arg18[%c8_25, %c0_26], %31 {strides = array<i32>} : memref<24x1xf32, #tpu.memory_space<vmem>>, vector<16x1xf32>,
    %c0_27 = arith.constant 0 : index
    %c0_28 = arith.constant 0 : index
    %38 = vector.load %arg8[%c0_27, %c0_28] : memref<1x32xf32, #tpu.memory_space<vmem>>, vector<1x32xf32>
    %c3 = arith.constant 3 : index
    %c0_29 = arith.constant 0 : index
    %39 = vector.load %arg7[%c3, %c0_29] : memref<4x32xf32, #tpu.memory_space<vmem>>, vector<1x32xf32>
    %40 = vector.broadcast %39 : vector<1x32xf32> to vector<16x32xf32>
    %41 = arith.mulf %25, %40 : vector<16x32xf32>
    %42 = vector.broadcast %38 : vector<1x32xf32> to vector<16x32xf32>
    %43 = arith.addf %42, %41 : vector<16x32xf32>
    %c8_30 = arith.constant 8 : index
    %c0_31 = arith.constant 0 : index
    %44 = vector.load %arg18[%c8_30, %c0_31] : memref<24x1xf32, #tpu.memory_space<vmem>>, vector<16x1xf32>
    %c7 = arith.constant 7 : index
    %c0_32 = arith.constant 0 : index
    %45 = vector.load %arg17[%c7, %c0_32] : memref<24x32xf32, #tpu.memory_space<vmem>>, vector<16x32xf32>
    %46 = vector.broadcast %44 : vector<16x1xf32> to vector<16x32xf32>
    %47 = arith.mulf %45, %46 : vector<16x32xf32>
    %c2 = arith.constant 2 : index
    %c0_33 = arith.constant 0 : index
    %48 = vector.load %arg7[%c2, %c0_33] : memref<4x32xf32, #tpu.memory_space<vmem>>, vector<1x32xf32>
    %49 = vector.broadcast %48 : vector<1x32xf32> to vector<16x32xf32>
    %50 = arith.mulf %47, %49 : vector<16x32xf32>
    %51 = arith.addf %43, %50 : vector<16x32xf32>
    %c7_34 = arith.constant 7 : index
    %c0_35 = arith.constant 0 : index
    %52 = vector.load %arg18[%c7_34, %c0_35] : memref<24x1xf32, #tpu.memory_space<vmem>>, vector<16x1xf32>
    %53 = arith.mulf %44, %52 : vector<16x1xf32>
    %c6 = arith.constant 6 : index
    %c0_36 = arith.constant 0 : index
    %54 = vector.load %arg17[%c6, %c0_36] : memref<24x32xf32, #tpu.memory_space<vmem>>, vector<16x32xf32>
    %55 = vector.broadcast %53 : vector<16x1xf32> to vector<16x32xf32>
    %56 = arith.mulf %54, %55 : vector<16x32xf32>
    %c1 = arith.constant 1 : index
    %c0_37 = arith.constant 0 : index
    %57 = vector.load %arg7[%c1, %c0_37] : memref<4x32xf32, #tpu.memory_space<vmem>>, vector<1x32xf32>
    %58 = vector.broadcast %57 : vector<1x32xf32> to vector<16x32xf32>
    %59 = arith.mulf %56, %58 : vector<16x32xf32>
    %60 = arith.addf %51, %59 : vector<16x32xf32>
    %c6_38 = arith.constant 6 : index
    %c0_39 = arith.constant 0 : index
    %61 = vector.load %arg18[%c6_38, %c0_39] : memref<24x1xf32, #tpu.memory_space<vmem>>, vector<16x1xf32>
    %62 = arith.mulf %53, %61 : vector<16x1xf32>
    %c5 = arith.constant 5 : index
    %c0_40 = arith.constant 0 : index
    %63 = vector.load %arg17[%c5, %c0_40] : memref<24x32xf32, #tpu.memory_space<vmem>>, vector<16x32xf32>
    %64 = vector.broadcast %62 : vector<16x1xf32> to vector<16x32xf32>
    %65 = arith.mulf %63, %64 : vector<16x32xf32>
    %c0_41 = arith.constant 0 : index
    %c0_42 = arith.constant 0 : index
    %66 = vector.load %arg7[%c0_41, %c0_42] : memref<4x32xf32, #tpu.memory_space<vmem>>, vector<1x32xf32>
    %67 = vector.broadcast %66 : vector<1x32xf32> to vector<16x32xf32>
    %68 = arith.mulf %65, %67 : vector<16x32xf32>
    %69 = arith.addf %60, %68 : vector<16x32xf32>
    %70 = arith.truncf %69 : vector<16x32xf32> to vector<16x32xbf16>
    %c0_43 = arith.constant 0 : index
    %c0_44 = arith.constant 0 : index
    %71 = vector.load %arg9[%c0_43, %c0_44] : memref<32x32xbf16, #tpu.memory_space<vmem>>, vector<32x32xbf16>
    %cst_45 = arith.constant dense<0.000000e+00> : vector<16x32xf32>
    %72 = tpu.matmul %70, %71, %cst_45 {dimension_numbers = #tpu.dot_dimension_numbers<[1], [0], [0], [1], [0, 0, 1, 1], [], []>} : vector<16x32xbf16>, vector<32x32xbf16>, vector<16x32xf32> -> vector<16x32xf32>
    %c0_46 = arith.constant 0 : index
    %c0_47 = arith.constant 0 : index
    %73 = vector.load %arg10[%c0_46, %c0_47] : memref<1x32xf32, #tpu.memory_space<vmem>>, vector<1x32xf32>
    %74 = vector.broadcast %73 : vector<1x32xf32> to vector<16x32xf32>
    %75 = arith.addf %72, %74 : vector<16x32xf32>
    %76 = arith.negf %75 : vector<16x32xf32>
    %77 = math.exp %76 : vector<16x32xf32>
    %cst_48 = arith.constant 1.000000e+00 : f32
    %78 = vector.broadcast %cst_48 : f32 to vector<16x32xf32>
    %79 = arith.addf %78, %77 : vector<16x32xf32>
    %80 = arith.divf %78, %79 : vector<16x32xf32>
    %c0_49 = arith.constant 0 : index
    %c0_50 = arith.constant 0 : index
    %81 = vector.load %arg11[%c0_49, %c0_50] : memref<32x32xbf16, #tpu.memory_space<vmem>>, vector<32x32xbf16>
    %cst_51 = arith.constant dense<0.000000e+00> : vector<16x32xf32>
    %82 = tpu.matmul %70, %81, %cst_51 {dimension_numbers = #tpu.dot_dimension_numbers<[1], [0], [0], [1], [0, 0, 1, 1], [], []>} : vector<16x32xbf16>, vector<32x32xbf16>, vector<16x32xf32> -> vector<16x32xf32>
    %c0_52 = arith.constant 0 : index
    %c0_53 = arith.constant 0 : index
    %83 = vector.load %arg12[%c0_52, %c0_53] : memref<1x32xf32, #tpu.memory_space<vmem>>, vector<1x32xf32>
    %84 = vector.broadcast %83 : vector<1x32xf32> to vector<16x32xf32>
    %85 = arith.addf %82, %84 : vector<16x32xf32>
    %86 = arith.negf %85 : vector<16x32xf32>
    %87 = math.exp %86 : vector<16x32xf32>
    %cst_54 = arith.constant 1.000000e+00 : f32
    %88 = vector.broadcast %cst_54 : f32 to vector<16x32xf32>
    %89 = arith.addf %88, %87 : vector<16x32xf32>
    %90 = arith.divf %88, %89 : vector<16x32xf32>
    %cst_55 = arith.constant -8.000000e+00 : f32
    %91 = vector.broadcast %cst_55 : f32 to vector<16x32xf32>
    %92 = arith.mulf %91, %90 : vector<16x32xf32>
    %c0_56 = arith.constant 0 : index
    %c0_57 = arith.constant 0 : index
    %93 = vector.load %arg13[%c0_56, %c0_57] : memref<1x32xf32, #tpu.memory_space<vmem>>, vector<1x32xf32>
    %cst_58 = arith.constant 0.000000e+00 : f32
    %94 = vector.broadcast %cst_58 : f32 to vector<1x32xf32>
    %95 = arith.maximumf %93, %94 : vector<1x32xf32>
    %96 = math.absf %93 : vector<1x32xf32>
    %cst_59 = arith.constant 0.000000e+00 : f32
    %97 = vector.broadcast %cst_59 : f32 to vector<1x32xf32>
    %98 = arith.subf %97, %96 : vector<1x32xf32>
    %99 = math.exp %98 : vector<1x32xf32>
    %cst_60 = arith.constant 1.000000e+00 : f32
    %100 = vector.broadcast %cst_60 : f32 to vector<1x32xf32>
    %101 = arith.addf %100, %99 : vector<1x32xf32>
    %102 = math.log %101 : vector<1x32xf32>
    %103 = arith.addf %95, %102 : vector<1x32xf32>
    %104 = vector.broadcast %103 : vector<1x32xf32> to vector<16x32xf32>
    %105 = arith.mulf %92, %104 : vector<16x32xf32>
    %106 = math.exp %105 : vector<16x32xf32>
    %c0_i32_61 = arith.constant 0 : i32
    %107 = vector.broadcast %c0_i32_61 : i32 to vector<16x1xi32>
    %108 = arith.cmpi eq, %27, %107 : vector<16x1xi32>
    %109 = arith.mulf %106, %106 : vector<16x32xf32>
    %cst_62 = arith.constant 1.000000e+00 : f32
    %110 = vector.broadcast %cst_62 : f32 to vector<16x32xf32>
    %111 = arith.subf %110, %109 : vector<16x32xf32>
    %cst_63 = arith.constant 0.000000e+00 : f32
    %112 = vector.broadcast %cst_63 : f32 to vector<16x32xf32>
    %113 = arith.maximumf %111, %112 : vector<16x32xf32>
    %114 = math.sqrt %113 : vector<16x32xf32>
    %cst_64 = arith.constant 1.000000e+00 : f32
    %115 = vector.shape_cast %108 : vector<16x1xi1> to vector<16x1xi1>
    %116 = vector.broadcast %115 : vector<16x1xi1> to vector<16x32xi1>
    %117 = vector.broadcast %cst_64 : f32 to vector<16x32xf32>
    %118 = arith.select %116, %117, %114 : vector<16x32xi1>, vector<16x32xf32>
    %cst_65 = arith.constant 0.000000e+00 : f32
    %119 = vector.shape_cast %108 : vector<16x1xi1> to vector<16x1xi1>
    %120 = vector.broadcast %119 : vector<16x1xi1> to vector<16x32xi1>
    %121 = vector.broadcast %cst_65 : f32 to vector<16x32xf32>
    %122 = arith.select %120, %121, %106 : vector<16x32xi1>, vector<16x32xf32>
    %c0_66 = arith.constant 0 : index
    %c0_67 = arith.constant 0 : index
    %123 = vector.load %arg19[%c0_66, %c0_67] : memref<16x32xf32, #tpu.memory_space<vmem>>, vector<16x32xf32>
    tpu.vector_store %arg19[%c0_66, %c0_67], %122 {strides = array<i32>} : memref<16x32xf32, #tpu.memory_space<vmem>>, vector<16x32xf32>,
    %124 = arith.mulf %69, %80 : vector<16x32xf32>
    %125 = arith.mulf %124, %118 : vector<16x32xf32>
    %c0_68 = arith.constant 0 : index
    %c0_69 = arith.constant 0 : index
    %126 = vector.load %arg20[%c0_68, %c0_69] : memref<16x32xf32, #tpu.memory_space<vmem>>, vector<16x32xf32>
    tpu.vector_store %arg20[%c0_68, %c0_69], %125 {strides = array<i32>} : memref<16x32xf32, #tpu.memory_space<vmem>>, vector<16x32xf32>,
    %c0_70 = arith.constant 0 : index
    %c0_71 = arith.constant 0 : index
    %127 = vector.load %arg21[%c0_70, %c0_71] : memref<16x32xf32, #tpu.memory_space<vmem>>, vector<16x32xf32>
    tpu.vector_store %arg21[%c0_70, %c0_71], %20 {strides = array<i32>} : memref<16x32xf32, #tpu.memory_space<vmem>>, vector<16x32xf32>,
    %c0_72 = arith.constant 0 : index
    %c0_73 = arith.constant 0 : index
    %128 = vector.load %arg14[%c0_72, %c0_73] : memref<32x32xbf16, #tpu.memory_space<vmem>>, vector<32x32xbf16>
    %c0_74 = arith.constant 0 : index
    %c0_75 = arith.constant 0 : index
    %129 = vector.load %arg15[%c0_74, %c0_75] : memref<1x32xf32, #tpu.memory_space<vmem>>, vector<1x32xf32>
    %130 = tpu.iota {dimensions = array<i32: 0>} : vector<8x1xi32>
    %cst_76 = arith.constant 0.000000e+00 : f32
    %131 = vector.broadcast %cst_76 : f32 to vector<1x32xf32>
    %c0_i32_77 = arith.constant 0 : i32
    %c2_i32 = arith.constant 2 : i32
    %132 = arith.addi %c0_i32_77, %c2_i32 : i32
    %c1_i32 = arith.constant 1 : i32
    %133 = scf.for %arg22 = %c0_i32_77 to %132 step %c1_i32 iter_args(%arg23 = %131) -> (vector<1x32xf32>)  : i32 {
      %c8_i32 = arith.constant 8 : i32
      %134 = arith.muli %arg22, %c8_i32 : i32
      %135 = tpu.assume_multiple %134, 8 : i32
      %136 = arith.index_cast %135 : i32 to index
      %c0_79 = arith.constant 0 : index
      %137 = vector.load %arg21[%136, %c0_79] : memref<16x32xf32, #tpu.memory_space<vmem>>, vector<8x32xf32>
      %cst_80 = arith.constant 0.000000e+00 : f32
      %138 = vector.broadcast %cst_80 : f32 to vector<8x32xf32>
      %c0_i32_81 = arith.constant 0 : i32
      %139 = arith.addi %135, %c0_i32_81 : i32
      %140 = arith.index_cast %139 : i32 to index
      %c0_82 = arith.constant 0 : index
      %141 = vector.load %arg19[%140, %c0_82] : memref<16x32xf32, #tpu.memory_space<vmem>>, vector<1x32xf32>
      %c0_i32_83 = arith.constant 0 : i32
      %142 = arith.addi %135, %c0_i32_83 : i32
      %143 = arith.index_cast %142 : i32 to index
      %c0_84 = arith.constant 0 : index
      %144 = vector.load %arg20[%143, %c0_84] : memref<16x32xf32, #tpu.memory_space<vmem>>, vector<1x32xf32>
      %145 = arith.mulf %141, %arg23 : vector<1x32xf32>
      %146 = arith.addf %145, %144 : vector<1x32xf32>
      %c0_i32_85 = arith.constant 0 : i32
      %147 = vector.broadcast %c0_i32_85 : i32 to vector<8x1xi32>
      %148 = arith.cmpi eq, %130, %147 : vector<8x1xi32>
      %149 = vector.shape_cast %148 : vector<8x1xi1> to vector<8x1xi1>
      %150 = vector.broadcast %149 : vector<8x1xi1> to vector<8x32xi1>
      %151 = vector.shape_cast %146 : vector<1x32xf32> to vector<1x32xf32>
      %152 = vector.broadcast %151 : vector<1x32xf32> to vector<8x32xf32>
      %153 = arith.select %150, %152, %138 : vector<8x32xi1>, vector<8x32xf32>
      %c1_i32_86 = arith.constant 1 : i32
      %154 = arith.addi %135, %c1_i32_86 : i32
      %155 = arith.index_cast %154 : i32 to index
      %c0_87 = arith.constant 0 : index
      %156 = vector.load %arg19[%155, %c0_87] : memref<16x32xf32, #tpu.memory_space<vmem>>, vector<1x32xf32>
      %c1_i32_88 = arith.constant 1 : i32
      %157 = arith.addi %135, %c1_i32_88 : i32
      %158 = arith.index_cast %157 : i32 to index
      %c0_89 = arith.constant 0 : index
      %159 = vector.load %arg20[%158, %c0_89] : memref<16x32xf32, #tpu.memory_space<vmem>>, vector<1x32xf32>
      %160 = arith.mulf %156, %146 : vector<1x32xf32>
      %161 = arith.addf %160, %159 : vector<1x32xf32>
      %c1_i32_90 = arith.constant 1 : i32
      %162 = vector.broadcast %c1_i32_90 : i32 to vector<8x1xi32>
      %163 = arith.cmpi eq, %130, %162 : vector<8x1xi32>
      %164 = vector.shape_cast %163 : vector<8x1xi1> to vector<8x1xi1>
      %165 = vector.broadcast %164 : vector<8x1xi1> to vector<8x32xi1>
      %166 = vector.shape_cast %161 : vector<1x32xf32> to vector<1x32xf32>
      %167 = vector.broadcast %166 : vector<1x32xf32> to vector<8x32xf32>
      %168 = arith.select %165, %167, %153 : vector<8x32xi1>, vector<8x32xf32>
      %c2_i32_91 = arith.constant 2 : i32
      %169 = arith.addi %135, %c2_i32_91 : i32
      %170 = arith.index_cast %169 : i32 to index
      %c0_92 = arith.constant 0 : index
      %171 = vector.load %arg19[%170, %c0_92] : memref<16x32xf32, #tpu.memory_space<vmem>>, vector<1x32xf32>
      %c2_i32_93 = arith.constant 2 : i32
      %172 = arith.addi %135, %c2_i32_93 : i32
      %173 = arith.index_cast %172 : i32 to index
      %c0_94 = arith.constant 0 : index
      %174 = vector.load %arg20[%173, %c0_94] : memref<16x32xf32, #tpu.memory_space<vmem>>, vector<1x32xf32>
      %175 = arith.mulf %171, %161 : vector<1x32xf32>
      %176 = arith.addf %175, %174 : vector<1x32xf32>
      %c2_i32_95 = arith.constant 2 : i32
      %177 = vector.broadcast %c2_i32_95 : i32 to vector<8x1xi32>
      %178 = arith.cmpi eq, %130, %177 : vector<8x1xi32>
      %179 = vector.shape_cast %178 : vector<8x1xi1> to vector<8x1xi1>
      %180 = vector.broadcast %179 : vector<8x1xi1> to vector<8x32xi1>
      %181 = vector.shape_cast %176 : vector<1x32xf32> to vector<1x32xf32>
      %182 = vector.broadcast %181 : vector<1x32xf32> to vector<8x32xf32>
      %183 = arith.select %180, %182, %168 : vector<8x32xi1>, vector<8x32xf32>
      %c3_i32 = arith.constant 3 : i32
      %184 = arith.addi %135, %c3_i32 : i32
      %185 = arith.index_cast %184 : i32 to index
      %c0_96 = arith.constant 0 : index
      %186 = vector.load %arg19[%185, %c0_96] : memref<16x32xf32, #tpu.memory_space<vmem>>, vector<1x32xf32>
      %c3_i32_97 = arith.constant 3 : i32
      %187 = arith.addi %135, %c3_i32_97 : i32
      %188 = arith.index_cast %187 : i32 to index
      %c0_98 = arith.constant 0 : index
      %189 = vector.load %arg20[%188, %c0_98] : memref<16x32xf32, #tpu.memory_space<vmem>>, vector<1x32xf32>
      %190 = arith.mulf %186, %176 : vector<1x32xf32>
      %191 = arith.addf %190, %189 : vector<1x32xf32>
      %c3_i32_99 = arith.constant 3 : i32
      %192 = vector.broadcast %c3_i32_99 : i32 to vector<8x1xi32>
      %193 = arith.cmpi eq, %130, %192 : vector<8x1xi32>
      %194 = vector.shape_cast %193 : vector<8x1xi1> to vector<8x1xi1>
      %195 = vector.broadcast %194 : vector<8x1xi1> to vector<8x32xi1>
      %196 = vector.shape_cast %191 : vector<1x32xf32> to vector<1x32xf32>
      %197 = vector.broadcast %196 : vector<1x32xf32> to vector<8x32xf32>
      %198 = arith.select %195, %197, %183 : vector<8x32xi1>, vector<8x32xf32>
      %c4_i32 = arith.constant 4 : i32
      %199 = arith.addi %135, %c4_i32 : i32
      %200 = arith.index_cast %199 : i32 to index
      %c0_100 = arith.constant 0 : index
      %201 = vector.load %arg19[%200, %c0_100] : memref<16x32xf32, #tpu.memory_space<vmem>>, vector<1x32xf32>
      %c4_i32_101 = arith.constant 4 : i32
      %202 = arith.addi %135, %c4_i32_101 : i32
      %203 = arith.index_cast %202 : i32 to index
      %c0_102 = arith.constant 0 : index
      %204 = vector.load %arg20[%203, %c0_102] : memref<16x32xf32, #tpu.memory_space<vmem>>, vector<1x32xf32>
      %205 = arith.mulf %201, %191 : vector<1x32xf32>
      %206 = arith.addf %205, %204 : vector<1x32xf32>
      %c4_i32_103 = arith.constant 4 : i32
      %207 = vector.broadcast %c4_i32_103 : i32 to vector<8x1xi32>
      %208 = arith.cmpi eq, %130, %207 : vector<8x1xi32>
      %209 = vector.shape_cast %208 : vector<8x1xi1> to vector<8x1xi1>
      %210 = vector.broadcast %209 : vector<8x1xi1> to vector<8x32xi1>
      %211 = vector.shape_cast %206 : vector<1x32xf32> to vector<1x32xf32>
      %212 = vector.broadcast %211 : vector<1x32xf32> to vector<8x32xf32>
      %213 = arith.select %210, %212, %198 : vector<8x32xi1>, vector<8x32xf32>
      %c5_i32 = arith.constant 5 : i32
      %214 = arith.addi %135, %c5_i32 : i32
      %215 = arith.index_cast %214 : i32 to index
      %c0_104 = arith.constant 0 : index
      %216 = vector.load %arg19[%215, %c0_104] : memref<16x32xf32, #tpu.memory_space<vmem>>, vector<1x32xf32>
      %c5_i32_105 = arith.constant 5 : i32
      %217 = arith.addi %135, %c5_i32_105 : i32
      %218 = arith.index_cast %217 : i32 to index
      %c0_106 = arith.constant 0 : index
      %219 = vector.load %arg20[%218, %c0_106] : memref<16x32xf32, #tpu.memory_space<vmem>>, vector<1x32xf32>
      %220 = arith.mulf %216, %206 : vector<1x32xf32>
      %221 = arith.addf %220, %219 : vector<1x32xf32>
      %c5_i32_107 = arith.constant 5 : i32
      %222 = vector.broadcast %c5_i32_107 : i32 to vector<8x1xi32>
      %223 = arith.cmpi eq, %130, %222 : vector<8x1xi32>
      %224 = vector.shape_cast %223 : vector<8x1xi1> to vector<8x1xi1>
      %225 = vector.broadcast %224 : vector<8x1xi1> to vector<8x32xi1>
      %226 = vector.shape_cast %221 : vector<1x32xf32> to vector<1x32xf32>
      %227 = vector.broadcast %226 : vector<1x32xf32> to vector<8x32xf32>
      %228 = arith.select %225, %227, %213 : vector<8x32xi1>, vector<8x32xf32>
      %c6_i32 = arith.constant 6 : i32
      %229 = arith.addi %135, %c6_i32 : i32
      %230 = arith.index_cast %229 : i32 to index
      %c0_108 = arith.constant 0 : index
      %231 = vector.load %arg19[%230, %c0_108] : memref<16x32xf32, #tpu.memory_space<vmem>>, vector<1x32xf32>
      %c6_i32_109 = arith.constant 6 : i32
      %232 = arith.addi %135, %c6_i32_109 : i32
      %233 = arith.index_cast %232 : i32 to index
      %c0_110 = arith.constant 0 : index
      %234 = vector.load %arg20[%233, %c0_110] : memref<16x32xf32, #tpu.memory_space<vmem>>, vector<1x32xf32>
      %235 = arith.mulf %231, %221 : vector<1x32xf32>
      %236 = arith.addf %235, %234 : vector<1x32xf32>
      %c6_i32_111 = arith.constant 6 : i32
      %237 = vector.broadcast %c6_i32_111 : i32 to vector<8x1xi32>
      %238 = arith.cmpi eq, %130, %237 : vector<8x1xi32>
      %239 = vector.shape_cast %238 : vector<8x1xi1> to vector<8x1xi1>
      %240 = vector.broadcast %239 : vector<8x1xi1> to vector<8x32xi1>
      %241 = vector.shape_cast %236 : vector<1x32xf32> to vector<1x32xf32>
      %242 = vector.broadcast %241 : vector<1x32xf32> to vector<8x32xf32>
      %243 = arith.select %240, %242, %228 : vector<8x32xi1>, vector<8x32xf32>
      %c7_i32 = arith.constant 7 : i32
      %244 = arith.addi %135, %c7_i32 : i32
      %245 = arith.index_cast %244 : i32 to index
      %c0_112 = arith.constant 0 : index
      %246 = vector.load %arg19[%245, %c0_112] : memref<16x32xf32, #tpu.memory_space<vmem>>, vector<1x32xf32>
      %c7_i32_113 = arith.constant 7 : i32
      %247 = arith.addi %135, %c7_i32_113 : i32
      %248 = arith.index_cast %247 : i32 to index
      %c0_114 = arith.constant 0 : index
      %249 = vector.load %arg20[%248, %c0_114] : memref<16x32xf32, #tpu.memory_space<vmem>>, vector<1x32xf32>
      %250 = arith.mulf %246, %236 : vector<1x32xf32>
      %251 = arith.addf %250, %249 : vector<1x32xf32>
      %c7_i32_115 = arith.constant 7 : i32
      %252 = vector.broadcast %c7_i32_115 : i32 to vector<8x1xi32>
      %253 = arith.cmpi eq, %130, %252 : vector<8x1xi32>
      %254 = vector.shape_cast %253 : vector<8x1xi1> to vector<8x1xi1>
      %255 = vector.broadcast %254 : vector<8x1xi1> to vector<8x32xi1>
      %256 = vector.shape_cast %251 : vector<1x32xf32> to vector<1x32xf32>
      %257 = vector.broadcast %256 : vector<1x32xf32> to vector<8x32xf32>
      %258 = arith.select %255, %257, %243 : vector<8x32xi1>, vector<8x32xf32>
      %259 = arith.mulf %258, %137 : vector<8x32xf32>
      %260 = arith.truncf %259 : vector<8x32xf32> to vector<8x32xbf16>
      %cst_116 = arith.constant dense<0.000000e+00> : vector<8x32xf32>
      %261 = tpu.matmul %260, %128, %cst_116 {dimension_numbers = #tpu.dot_dimension_numbers<[1], [0], [0], [1], [0, 0, 1, 1], [], []>} : vector<8x32xbf16>, vector<32x32xbf16>, vector<8x32xf32> -> vector<8x32xf32>
      %262 = vector.broadcast %129 : vector<1x32xf32> to vector<8x32xf32>
      %263 = arith.addf %261, %262 : vector<8x32xf32>
      %c0_117 = arith.constant 0 : index
      %264 = arith.index_cast %135 : i32 to index
      %c0_118 = arith.constant 0 : index
      %265 = vector.load %arg16[%c0_117, %264, %c0_118] : memref<1x16x32xf32, #tpu.memory_space<vmem>>, vector<1x8x32xf32>
      %266 = vector.shape_cast %265 : vector<1x8x32xf32> to vector<8x32xf32>
      %267 = vector.shape_cast %263 : vector<8x32xf32> to vector<1x8x32xf32>
      tpu.vector_store %arg16[%c0_117, %264, %c0_118], %267 {strides = array<i32>} : memref<1x16x32xf32, #tpu.memory_space<vmem>>, vector<1x8x32xf32>,
      scf.yield %251 : vector<1x32xf32>
    }
    %c2_i32_78 = arith.constant 2 : i32
    return
  }
  func.func @transform_0(%arg0: i32) -> (i32, i32, i32) {
    %c0_i32 = arith.constant 0 : i32
    %c0_i32_0 = arith.constant 0 : i32
    %c0_i32_1 = arith.constant 0 : i32
    return %arg0, %c0_i32, %c0_i32_0 : i32, i32, i32
  }
  func.func @transform_1(%arg0: i32) -> (i32, i32, i32) {
    %c0_i32 = arith.constant 0 : i32
    %c0_i32_0 = arith.constant 0 : i32
    %c0_i32_1 = arith.constant 0 : i32
    return %arg0, %c0_i32, %c0_i32_0 : i32, i32, i32
  }
  func.func @transform_2(%arg0: i32) -> (i32, i32) {
    %c0_i32 = arith.constant 0 : i32
    %c0_i32_0 = arith.constant 0 : i32
    %c0_i32_1 = arith.constant 0 : i32
    return %c0_i32, %c0_i32_0 : i32, i32
  }
  func.func @transform_3(%arg0: i32) -> (i32, i32) {
    %c0_i32 = arith.constant 0 : i32
    %c0_i32_0 = arith.constant 0 : i32
    %c0_i32_1 = arith.constant 0 : i32
    return %c0_i32, %c0_i32_0 : i32, i32
  }
  func.func @transform_4(%arg0: i32) -> (i32, i32) {
    %c0_i32 = arith.constant 0 : i32
    %c0_i32_0 = arith.constant 0 : i32
    %c0_i32_1 = arith.constant 0 : i32
    return %c0_i32, %c0_i32_0 : i32, i32
  }
  func.func @transform_5(%arg0: i32) -> (i32, i32) {
    %c0_i32 = arith.constant 0 : i32
    %c0_i32_0 = arith.constant 0 : i32
    %c0_i32_1 = arith.constant 0 : i32
    return %c0_i32, %c0_i32_0 : i32, i32
  }
  func.func @transform_6(%arg0: i32) -> (i32, i32) {
    %c0_i32 = arith.constant 0 : i32
    %c0_i32_0 = arith.constant 0 : i32
    %c0_i32_1 = arith.constant 0 : i32
    return %c0_i32, %c0_i32_0 : i32, i32
  }
  func.func @transform_7(%arg0: i32) -> (i32, i32) {
    %c0_i32 = arith.constant 0 : i32
    %c0_i32_0 = arith.constant 0 : i32
    %c0_i32_1 = arith.constant 0 : i32
    return %c0_i32, %c0_i32_0 : i32, i32
  }
  func.func @transform_8(%arg0: i32) -> (i32, i32) {
    %c0_i32 = arith.constant 0 : i32
    %c0_i32_0 = arith.constant 0 : i32
    %c0_i32_1 = arith.constant 0 : i32
    return %c0_i32, %c0_i32_0 : i32, i32
  }
  func.func @transform_9(%arg0: i32) -> (i32, i32) {
    %c0_i32 = arith.constant 0 : i32
    %c0_i32_0 = arith.constant 0 : i32
    %c0_i32_1 = arith.constant 0 : i32
    return %c0_i32, %c0_i32_0 : i32, i32
  }
  func.func @transform_10(%arg0: i32) -> (i32, i32) {
    %c0_i32 = arith.constant 0 : i32
    %c0_i32_0 = arith.constant 0 : i32
    %c0_i32_1 = arith.constant 0 : i32
    return %c0_i32, %c0_i32_0 : i32, i32
  }
  func.func @transform_11(%arg0: i32) -> (i32, i32) {
    %c0_i32 = arith.constant 0 : i32
    %c0_i32_0 = arith.constant 0 : i32
    %c0_i32_1 = arith.constant 0 : i32
    return %c0_i32, %c0_i32_0 : i32, i32
  }
  func.func @transform_12(%arg0: i32) -> (i32, i32) {
    %c0_i32 = arith.constant 0 : i32
    %c0_i32_0 = arith.constant 0 : i32
    %c0_i32_1 = arith.constant 0 : i32
    return %c0_i32, %c0_i32_0 : i32, i32
  }
  func.func @transform_13(%arg0: i32) -> (i32, i32) {
    %c0_i32 = arith.constant 0 : i32
    %c0_i32_0 = arith.constant 0 : i32
    %c0_i32_1 = arith.constant 0 : i32
    return %c0_i32, %c0_i32_0 : i32, i32
  }
  func.func @transform_14(%arg0: i32) -> (i32, i32) {
    %c0_i32 = arith.constant 0 : i32
    %c0_i32_0 = arith.constant 0 : i32
    %c0_i32_1 = arith.constant 0 : i32
    return %c0_i32, %c0_i32_0 : i32, i32
  }
  func.func @transform_15(%arg0: i32) -> (i32, i32, i32) {
    %c0_i32 = arith.constant 0 : i32
    %c0_i32_0 = arith.constant 0 : i32
    %c0_i32_1 = arith.constant 0 : i32
    return %arg0, %c0_i32, %c0_i32_0 : i32, i32, i32
  }
}

</mosaic_0001>

<bundles_post_ra>
// kernel: tpu_custom_call.1
= control target key start
LH: loop header
LB: loop body
LE: loop exit
PB: predicated region body
PF: predicated region fallthrough
CT: control target
= control target key end

     0   :  { %s2607_s0 = inlined_call_operand.vmem [shape: f32[2,16,32], index: 0, kind: input, shape index: {}]   ;;  %s2608_s1 = inlined_call_operand.vmem [shape: s32[2,16,1], index: 1, kind: input, shape index: {}]   ;;  %s2609_s2 = inlined_call_operand.hbm [shape: bf16[32,32], index: 2, kind: input, shape index: {}]   ;;  %s2610_s3 = inlined_call_operand.hbm [shape: f32[1,32], index: 3, kind: input, shape index: {}]   ;;  %s2611_s4 = inlined_call_operand.vmem [shape: bf16[32,32], index: 4, kind: input, shape index: {}]   ;;  %s2612_s5 = inlined_call_operand.hbm [shape: f32[1,32], index: 5, kind: input, shape index: {}]   ;;  %s2613_s6 = inlined_call_operand.hbm [shape: f32[4,32], index: 6, kind: input, shape index: {}]   ;;  %s2614_s7 = inlined_call_operand.hbm [shape: f32[1,32], index: 7, kind: input, shape index: {}]   ;;  %s2615_s8 = inlined_call_operand.vmem [shape: bf16[32,32], index: 8, kind: input, shape index: {}]   ;;  %s2616_s9 = inlined_call_operand.vmem [shape: f32[1,32], index: 9, kind: input, shape index: {}]   ;;  %s2617_s10 = inlined_call_operand.hbm [shape: bf16[32,32], index: 10, kind: input, shape index: {}]   ;;  %s2618_s11 = inlined_call_operand.vmem [shape: f32[1,32], index: 11, kind: input, shape index: {}]   ;;  %s2619_s12 = inlined_call_operand.vmem [shape: f32[1,32], index: 12, kind: input, shape index: {}]   ;;  %s2620_s13 = inlined_call_operand.vmem [shape: bf16[32,32], index: 13, kind: input, shape index: {}]   ;;  %s2621_s14 = inlined_call_operand.vmem [shape: f32[1,32], index: 14, kind: input, shape index: {}]   ;;  %s2622_s15 = inlined_call_operand.hbm [shape: f32[2,16,32], index: 15, kind: output, shape index: {}]  }
   0x1   :  { %2635 = sst [smem:[#allocation31_spill]] %s2610_s3 }
   0x2   :  { %2636 = sst [smem:[#allocation32_spill]] %s2613_s6 }
   0x3   :  { %2637 = sst [smem:[#allocation33_spill]] %s2616_s9 }
   0x4   :  { %2638 = sst [smem:[#allocation34_spill]] %s2618_s11 }
   0x5   :  { %2639 = sst [smem:[#allocation35_spill]] %s2619_s12 }
   0x6   :  { %2640 = sst [smem:[#allocation36_spill]] %s2622_s15 }
   0x7   :  { %20 = vsyncpa [#allocation8], 0 }
   0x8   :  { %21 = vsyncpa [#allocation11], 0 }
   0x9   :  { %22 = vsyncpa [#allocation14], 0 }
   0xa   :  { %23 = vsyncpa [#allocation17], 0 }
   0xb   :  { %24 = vsyncpa [#allocation9], 0 }
   0xc   :  { %26 = vsyncpa [#allocation9 + $0x1], 0  ;;  %s2163_s18 = smov 0   ;;  %s2165_s19 = smov 0  }
   0xd   :  { %s2167_s20 = smov 0   ;;  %s2169_s21 = smov 0  }
   0xe LB: > { %2641 = sst [smem:[#allocation24_spill]] %s2044_s18  ;;  %s2184_s22 = sadd.s32 4294967295, %s2056_s21   ;;  %s2056_s21 = sphi %s2169_s21, %s2674_s21   ;;  %s2052_s20 = sphi %s2167_s20, %s2676_s20   ;;  %s2048_s19 = sphi %s2165_s19, %s2678_s19   ;;  %s2044_s18 = sphi %s2163_s18, %s2677_s18  }
   0xf   : > { %2642 = sst [smem:[#allocation25_spill]] %s2052_s20  ;;  %s1490_s23 = sadd.s32 4294967294, %s2056_s21  }
  0x10   : > { %2643 = sst [smem:[#allocation26_spill]] %s2056_s21  ;;  %s2188_s24 = sadd.s32 1, %s2056_s21  }
  0x11   : > { %2644 = sst [smem:[#allocation27_spill]] %s2188_s24  ;;  %s364_s25 = sadd.s32 1, %s2052_s20 }
  0x12   : > { %s361_s26 = ssub.s32 %s2056_s21, %s2188_s24  ;;  %p374_p0 = scmp.ne.s32.totalorder %s2052_s20, %s2048_s19 }
  0x13   : > { %p362_p1 = scmp.eq.s32.totalorder %s361_s26, 0  ;;  %p375_p2 = scmp.eq.s32.totalorder %s2184_s22, 1 }
  0x14   : > { %p380_p3 = scmp.ne.s32.totalorder %s2048_s19, %s2044_s18  ;;  %p381_p4 = scmp.eq.s32.totalorder %s1490_s23, 1 }
  0x15   : > { %s2199_s27 = scalar_select %p362_p1, %s2052_s20, %s364_s25  }
  0x16   : > { %p2201_p5 = por %p375_p2, %p374_p0  ;;  %p2205_p6 = por %p381_p4, %p380_p3 }
  0x17   : > { %2645 = sst [smem:[#allocation28_spill]] %s2199_s27  ;;  %p1491_p7 = scmp.ge.s32.totalorder %s2056_s21, 1 }
  0x18   : > { %s2646_s28 = scalar_select %p2201_p5, 1, 0 }
  0x19   : > { %s2648_s29 = scalar_select %p2205_p6, 1, 0 }
  0x1a   : > { %2647 = sst [smem:[#allocation29_spill]] %s2646_s28  ;;  %p388_p8 = scmp.lt.s32.totalorder %s2056_s21, 3 }
  0x1b   : > { %2649 = sst [smem:[#allocation30_spill]] %s2648_s29  ;;  %p2630_p9 = scmp.eq.s32.totalorder %s2184_s22, 0 }
  0x1c   : > { %p2212_p10 = pnand %p1491_p7, %p388_p8  ;;  %s2066_s16 = smov [#allocation10]  }
  0x1d   : > { %s414_s17 = sshll.u32 %s2066_s16, 4  ;;  %s2067_s23 = smov [#allocation13]   ;;  %s415_s17 = int_to_ptr.vmem [resolvable:$true] %s414_s17 }
  0x1e   : > { %s2650_s30 = scalar_select %p2212_p10, 1, 0 }
  0x1f   : > { %p1660_p11 = pneg %p2212_p10  ;;  %s439_s25 = sshll.u32 %s2067_s23, 4  ;;  %s2224_s25 = int_to_ptr.vmem [resolvable:$true] %s439_s25 }
  0x20   : > { %s2068_s27 = smov [#allocation7]   ;;  %s2652_s3 = sld [smem:[#allocation31_spill]] }
  0x21   : > { %p2220_p12 = pnand %p2630_p9, %p1660_p11  ;;  %s400_s20 = sshll.u32 %s2068_s27, 4  ;;  %s2226_s20 = int_to_ptr.vmem [resolvable:$true] %s400_s20 }
  0x23   : > { %p2236_p0 = pneg %p2220_p12 }
  0x26   : > { %s1802_s16 = scalar_lea.hbm %s2652_s3, 16 }
  0x27   : > { %p1803_p13 = scmp.ne.s32.totalorder %s2652_s3, %s1802_s16  ;;  %p1809_p3 = scmp.lt.u32.totalorder %s1802_s16, %s2652_s3 }
  0x29   : > { %p1805_p1 = pnand %p2236_p0, %p1803_p13 }
  0x2b   : > { %p1806_p2 = pneg %p1805_p1 }
  0x2d   : > { %p1811_p4 = pnand %p1809_p3, %p1806_p2 }
  0x2f   : > { %1814 = shalt.err (!%p1811_p4)
}
  0x30   : > { %s1815_s24 = scalar_lea.vmem %s415_s17, 16  ;;  %s1822_s18 = scalar_lea.vmem %s415_s17, 32 }
  0x31   : > { %p1816_p7 = scmp.ne.s32.totalorder %s415_s17, %s1815_s24  ;;  %p1823_p9 = scmp.lt.s32.totalorder %s415_s17, %s415_s17 }
  0x32   : > { %p1824_p6 = scmp.lt.s32.totalorder %s1822_s18, %s1815_s24 }
  0x33   : > { %p1818_p8 = pnand %p1816_p7, %p2236_p0 }
  0x34   : > { %p1825_p5 = por %p1824_p6, %p1823_p9 }
  0x35   : > { %p1819_p11 = pneg %p1818_p8 }
  0x37   : > { %p1826_p10 = pnand %p1825_p5, %p1819_p11 }
  0x39   : > { %1829 = shalt.err (!%p1826_p10)
}
  0x3a   : > { %1666 = dma.hbm_to_vmem [thread:$0]  (!%p2220_p12), %s2652_s3, 16, %s415_s17, [#allocation11]  }
  0x3b   : > { %s2654_s6 = sld [smem:[#allocation32_spill]] }
  0x41   : > { %s1830_s27 = scalar_lea.hbm %s2654_s6, 64 }
  0x42   : > { %p1831_p13 = scmp.ne.s32.totalorder %s2654_s6, %s1830_s27  ;;  %p1837_p5 = scmp.lt.u32.totalorder %s1830_s27, %s2654_s6 }
  0x44   : > { %p1833_p1 = pnand %p1831_p13, %p2236_p0 }
  0x46   : > { %p1834_p6 = pneg %p1833_p1 }
  0x48   : > { %p1839_p9 = pnand %p1837_p5, %p1834_p6 }
  0x4a   : > { %1842 = shalt.err (!%p1839_p9)
}
  0x4b   : > { %s1843_s17 = scalar_lea.vmem %s2224_s25, 64  ;;  %p1851_p4 = scmp.lt.s32.totalorder %s2224_s25, %s2224_s25 }
  0x4c   : > { %p1844_p10 = scmp.ne.s32.totalorder %s2224_s25, %s1843_s17  ;;  %p1852_p7 = scmp.lt.s32.totalorder %s1843_s17, %s1843_s17 }
  0x4e   : > { %p1846_p2 = pnand %p1844_p10, %p2236_p0  ;;  %p1853_p8 = por %p1852_p7, %p1851_p4 }
  0x50   : > { %p1847_p3 = pneg %p1846_p2 }
  0x52   : > { %p1854_p11 = pnand %p1853_p8, %p1847_p3 }
  0x54   : > { %1857 = shalt.err (!%p1854_p11)
}
  0x55   : > { %1672 = dma.hbm_to_vmem [thread:$0]  (!%p2220_p12), %s2654_s6, 64, %s2224_s25, [#allocation14]  }
  0x56   : > { %s1858_s15 = scalar_lea.hbm %s2609_s2, 256 }
  0x57   : > { %p1859_p13 = scmp.ne.s32.totalorder %s2609_s2, %s1858_s15  ;;  %p1865_p5 = scmp.lt.u32.totalorder %s1858_s15, %s2609_s2 }
  0x59   : > { %p1861_p1 = pnand %p1859_p13, %p2236_p0 }
  0x5b   : > { %p1862_p6 = pneg %p1861_p1 }
  0x5d   : > { %p1867_p9 = pnand %p1865_p5, %p1862_p6 }
  0x5f   : > { %1870 = shalt.err (!%p1867_p9)
}
  0x60   : > { %s1871_s25 = scalar_lea.vmem %s2226_s20, 256  ;;  %p1879_p4 = scmp.lt.s32.totalorder %s2226_s20, %s2226_s20 }
  0x61   : > { %p1872_p10 = scmp.ne.s32.totalorder %s2226_s20, %s1871_s25  ;;  %p1880_p7 = scmp.lt.s32.totalorder %s1871_s25, %s1871_s25 }
  0x63   : > { %p1874_p2 = pnand %p1872_p10, %p2236_p0  ;;  %p1881_p8 = por %p1880_p7, %p1879_p4 }
  0x65   : > { %p1875_p3 = pneg %p1874_p2 }
  0x67   : > { %p1882_p11 = pnand %p1881_p8, %p1875_p3 }
  0x69   : > { %1885 = shalt.err (!%p1882_p11)
}
  0x6a   : > { %s2069_s17 = smov 64   ;;  %s2070_s9 = smov 4  }
  0x6b   : > { %1663 = dma.hbm_to_vmem [thread:$0]  (!%p2220_p12), %s2609_s2, 256, %s2226_s20, [#allocation8], %s2069_s17, %s2069_s17, %s2070_s9  }
  0x6c   : > { %s2071_s29 = smov [#allocation12]   ;;  %s2072_s16 = smov [#allocation15]  }
  0x6d   : > { %s428_s15 = sshll.u32 %s2071_s29, 4  ;;  %s450_s27 = sshll.u32 %s2072_s16, 4  ;;  %s429_s15 = int_to_ptr.vmem [resolvable:$true] %s428_s15  ;;  %s451_s27 = int_to_ptr.vmem [resolvable:$true] %s450_s27 }
  0x6e   : > { %s1886_s25 = scalar_lea.hbm %s2612_s5, 16 }
  0x6f   : > { %p1887_p13 = scmp.ne.s32.totalorder %s2612_s5, %s1886_s25  ;;  %p1893_p5 = scmp.lt.u32.totalorder %s1886_s25, %s2612_s5 }
  0x71   : > { %p1889_p1 = pnand %p1887_p13, %p2236_p0 }
  0x73   : > { %p1890_p6 = pneg %p1889_p1 }
  0x75   : > { %p1895_p9 = pnand %p1893_p5, %p1890_p6 }
  0x77   : > { %1898 = shalt.err (!%p1895_p9)
}
  0x78   : > { %s1899_s20 = scalar_lea.vmem %s429_s15, 16  ;;  %s1906_s28 = scalar_lea.vmem %s429_s15, 32 }
  0x79   : > { %p1900_p10 = scmp.ne.s32.totalorder %s429_s15, %s1899_s20  ;;  %p1907_p4 = scmp.lt.s32.totalorder %s429_s15, %s429_s15 }
  0x7a   : > { %p1908_p7 = scmp.lt.s32.totalorder %s1906_s28, %s1899_s20 }
  0x7b   : > { %p1902_p2 = pnand %p1900_p10, %p2236_p0 }
  0x7c   : > { %p1909_p8 = por %p1908_p7, %p1907_p4 }
  0x7d   : > { %p1903_p3 = pneg %p1902_p2 }
  0x7f   : > { %p1910_p11 = pnand %p1909_p8, %p1903_p3 }
  0x81   : > { %1913 = shalt.err (!%p1910_p11)
}
  0x82   : > { %1669 = dma.hbm_to_vmem [thread:$0]  (!%p2220_p12), %s2612_s5, 16, %s429_s15, [#allocation11]  }
  0x83   : > { %s1914_s21 = scalar_lea.hbm %s2614_s7, 16 }
  0x84   : > { %p1915_p13 = scmp.ne.s32.totalorder %s2614_s7, %s1914_s21  ;;  %p1921_p5 = scmp.lt.u32.totalorder %s1914_s21, %s2614_s7 }
  0x86   : > { %p1917_p1 = pnand %p1915_p13, %p2236_p0 }
  0x88   : > { %p1918_p6 = pneg %p1917_p1 }
  0x8a   : > { %p1923_p9 = pnand %p1921_p5, %p1918_p6 }
  0x8c   : > { %1926 = shalt.err (!%p1923_p9)
}
  0x8d   : > { %s1927_s25 = scalar_lea.vmem %s451_s27, 16  ;;  %s1934_s15 = scalar_lea.vmem %s451_s27, 32 }
  0x8e   : > { %p1928_p10 = scmp.ne.s32.totalorder %s451_s27, %s1927_s25  ;;  %p1935_p4 = scmp.lt.s32.totalorder %s451_s27, %s451_s27 }
  0x8f   : > { %p1936_p7 = scmp.lt.s32.totalorder %s1934_s15, %s1927_s25 }
  0x90   : > { %p1930_p2 = pnand %p1928_p10, %p2236_p0 }
  0x91   : > { %p1937_p8 = por %p1936_p7, %p1935_p4 }
  0x92   : > { %p1931_p3 = pneg %p1930_p2 }
  0x94   : > { %p1938_p11 = pnand %p1937_p8, %p1931_p3 }
  0x96   : > { %1941 = shalt.err (!%p1938_p11)
}
  0x97   : > { %1675 = dma.hbm_to_vmem [thread:$0]  (!%p2220_p12), %s2614_s7, 16, %s451_s27, [#allocation14]  }
  0x98   : > { %s2073_s3 = smov [#allocation16]   ;;  %s1942_s21 = scalar_lea.hbm %s2617_s10, 256 }
  0x99   : > { %s466_s6 = sshll.u32 %s2073_s3, 4  ;;  %p1943_p13 = scmp.ne.s32.totalorder %s2617_s10, %s1942_s21  ;;  %s467_s6 = int_to_ptr.vmem [resolvable:$true] %s466_s6 }
  0x9a   : > { %p1949_p5 = scmp.lt.u32.totalorder %s1942_s21, %s2617_s10 }
  0x9b   : > { %p1945_p1 = pnand %p1943_p13, %p2236_p0 }
  0x9d   : > { %p1946_p6 = pneg %p1945_p1 }
  0x9f   : > { %p1951_p9 = pnand %p1949_p5, %p1946_p6 }
  0xa1   : > { %1954 = shalt.err (!%p1951_p9)
}
  0xa2   : > { %s1955_s27 = scalar_lea.vmem %s467_s6, 256  ;;  %p1963_p4 = scmp.lt.s32.totalorder %s467_s6, %s467_s6 }
  0xa3   : > { %p1956_p10 = scmp.ne.s32.totalorder %s467_s6, %s1955_s27  ;;  %p1964_p7 = scmp.lt.s32.totalorder %s1955_s27, %s1955_s27 }
  0xa5   : > { %p1958_p2 = pnand %p1956_p10, %p2236_p0  ;;  %p1965_p8 = por %p1964_p7, %p1963_p4 }
  0xa7   : > { %p1959_p3 = pneg %p1958_p2 }
  0xa9   : > { %p1966_p11 = pnand %p1965_p8, %p1959_p3 }
  0xab   : > { %1969 = shalt.err (!%p1966_p11)
}
  0xac   : > { %1678 = dma.hbm_to_vmem [thread:$0]  (!%p2220_p12), %s2617_s10, 256, %s467_s6, [#allocation17], %s2069_s17, %s2069_s17, %s2070_s9  }
  0xad   : > { %p2655_p13 = scmp.ne.s32.totalorder %s2650_s30, 0 }
  0xae   : > { %p2656_p0 = scmp.eq.s32.totalorder (!%p2655_p13), %s2184_s22, 0 }
  0xaf   : > { %510 = sbr.rel (%p2655_p13) target bundleno = 996 (0x3e4), region = 80 }
  0xb6   : > { %2023 = dma.done.wait (%p2656_p0), [#allocation8], 256   ;;  %p2657_p1 = pmov %p2656_p0 }
  0xb7   : > { %p2658_p6 = pmov %p2656_p0 }
  0xb8   : > { %2025 = vsyncadd (%p2657_p1), [#allocation8], 4294967040 }
  0xb9   : > { %2027 = dma.done.wait (%p2658_p6), [#allocation11], 32   ;;  %p2659_p5 = pmov %p2656_p0 }
  0xba   : > { %p2660_p9 = pmov %p2656_p0 }
  0xbb   : > { %2029 = vsyncadd (%p2659_p5), [#allocation11], 4294967264 }
  0xbc   : > { %2031 = dma.done.wait (%p2660_p9), [#allocation14], 80   ;;  %p2661_p12 = pmov %p2656_p0 }
  0xbd   : > { %p2662_p10 = pmov %p2656_p0 }
  0xbe   : > { %2033 = vsyncadd (%p2661_p12), [#allocation14], 4294967216 }
  0xbf   : > { %2035 = dma.done.wait (%p2662_p10), [#allocation17], 256   ;;  %p2663_p2 = pmov %p2656_p0 }
  0xc0   : > { %p583_p3 = scmp.lt.s32.totalorder %s2184_s22, 1  ;;  %vm620_vm0 = vcmask 261120   ;;  %v2074_v0 = vmov 0.0   ;;  %vm2075_vm1 = vmmov 0   ;;  %vm758_vm2 = vcmask 7168   ;;  %v1762_v8 = vld [vmem:[%s2611_s4] sm:$0xff]  }
  0xc1   : > { %2037 = vsyncadd (%p2663_p2), [#allocation17], 4294967040  ;;  %1602 = vmatprep.subr.bf16.mxu1 %v2074_v0  ;;  %1606 = vmatprep.mubr.msk.bf16.mxu1 %vm2075_vm1, %v2074_v0  ;;  %755 = vst.msk [vmem:[#allocation2] sm:$0xff] %vm620_vm0, %v2074_v0  ;;  %v2076_v1 = vmov 1.0   ;;  %v2077_v2 = vmov 0   ;;  %v1763_v9 = vld [vmem:[%s2611_s4 + $0x8] sm:$0xff]  }
  0xc2   : > { %s584_s30 = scalar_select %p583_p3, %s2184_s22, 1  ;;  %759 = vst.msk [vmem:[#allocation3] sm:$0xff] %vm758_vm2, %v2076_v1  ;;  %1761 = vset.pattern.permute.xlu1 %v2077_v2  ;;  %1760 = vset.pattern.permute.xlu0 %v2077_v2  ;;  %v2390_v3 = vld [vmem:[%s2620_s13] sm:$0xf]  ;;  %v2395_v4 = vld [vmem:[%s2620_s13 + $0x4] sm:$0xf] }
  0xc3   : > { %1594 = vmatprep.subr.bf16.mxu0 %v2074_v0  ;;  %1598 = vmatprep.mubr.msk.bf16.mxu0 %vm2075_vm1, %v2074_v0  ;;  %v2400_v5 = vld [vmem:[%s2620_s13 + $0x8] sm:$0xf]  ;;  %v2408_v6 = vld [vmem:[%s2620_s13 + $0xc] sm:$0xf]  ;;  %v2413_v7 = vld [vmem:[%s2621_s14] ss:$0 sm:$0xff] }
  0xc4   : > { %s1576_s26 = sshll.u32 %s584_s30, 4  ;;  %1603 = vmatpush3.bf16.msra.mxu1 %v1762_v8  ;;  %v1764_v29 = vld [vmem:[#allocation7] sm:$0xff]   ;;  %v1765_v30 = vld [vmem:[#allocation7 + $0x8] sm:$0xff]   ;;  %s580_s3 = sand.u32 1, %s2048_s19   ;;  %v1515_v35 = vld [vmem:[#allocation12] ss:$0 sm:$0xff] }
  0xc5   : > { %s587_s12 = scalar_lea.vmem %s2607_s0, %s1576_s26  ;;  %s592_s25 = scalar_lea.vmem %s2608_s1, %s1576_s26  ;;  %1604 = vmatprep.subr.bf16.mxu1 %v2074_v0  ;;  %1595 = vmatpush3.bf16.msra.mxu0 %v1764_v29  ;;  %v1766_v31 = vld [vmem:[#allocation16] sm:$0xff]   ;;  %v1768_v33 = vld [vmem:[#allocation16 + $0x8] sm:$0xff]   ;;  %v1521_v44 = vld [vmem:[#allocation13 + $0x3] ss:$0 sm:$0xff] }
  0xc6   : > { %v594_v10 = vld [vmem:[%s587_s12] sm:$0xff]  ;;  %v595_v11 = vld [vmem:[%s587_s12 + $0x8] sm:$0xff]  ;;  %1596 = vmatprep.subr.bf16.mxu0 %v2074_v0  ;;  %s2449_s6 = sshll.u32 %s580_s3, 4  ;;  %v1522_v47 = vld [vmem:[#allocation15] ss:$0 sm:$0xff]  ;;  %s2664_s21 = sld [smem:[#allocation35_spill]] }
  0xc7   : > { %v747_v12 = vld [vmem:[%s592_s25] sm:$0xff]  ;;  %v748_v13 = vld [vmem:[%s592_s25 + $0x8] sm:$0xff]  ;;  %v596_v16 = vpack.c.bf16 %v595_v11, %v594_v10  ;;  %v1523_v50 = vld [vmem:[#allocation13 + $0x2] ss:$0 sm:$0xff]  ;;  %s2665_s24 = sld [smem:[#allocation34_spill]]  ;;  %s2666_s25 = sld [smem:[#allocation33_spill]] }
  0xc8   : > { %vm749_vm3 = vcmp.ne.s32.totalorder %v747_v12, 0  ;;  %vm750_vm4 = vcmp.ne.s32.totalorder %v748_v13, 0  ;;  %1605 = vmatpush3.bf16.msra.mxu1 %v1763_v9  ;;  %vm1037_vm5 = vcmp.eq.s32.totalorder %v747_v12, 0  ;;  %vm1038_vm6 = vcmp.eq.s32.totalorder %v748_v13, 0  ;;  %v1767_v32 = vld [vmem:[%s2615_s8] sm:$0xff]   ;;  %v1769_v34 = vld [vmem:[%s2615_s8 + $0x8] sm:$0xff]  }
  0xc9   : > { %v1519_v14 = vsel %vm749_vm3, 1.0, %v2074_v0  ;;  %v1520_v15 = vsel %vm750_vm4, 1.0, %v2074_v0  ;;  %1618 = vmatprep.subr.bf16.mxu1 %v2074_v0  ;;  %v1059_v27 = vsel %vm1037_vm5, 1, %v2077_v2  ;;  %v1060_v28 = vsel %vm1038_vm6, 1, %v2077_v2  ;;  %1597 = vmatpush3.bf16.msra.mxu0 %v1765_v30  ;;  %v1524_v54 = vld [vmem:[#allocation13 + $0x1] ss:$0 sm:$0xff] }
  0xca   : > { %760 = vst.msk [vmem:[#allocation3 + $0x8] sm:$0xff] %vm758_vm2, %v1519_v14  ;;  %761 = vst.msk [vmem:[#allocation3 + $0x10] sm:$0xff] %vm758_vm2, %v1520_v15  ;;  %1610 = vmatprep.subr.bf16.mxu0 %v2074_v0  ;;  %v1525_v13 = vld [vmem:[#allocation13] ss:$0 sm:$0xff]  ;;  %s582_s15 = scalar_lea.vmem [#allocation18], %s2449_s6  ;;  %s2491_s30 = smov 0  }
  0xcb   : > { %1607 = vmatmul.mubr.msk.bf16.vlgmr.msra.gmra.mrb[0].mxu1 %vm620_vm0, %v596_v16 }
  0xcc   : > { %1622 = vmatprep.mubr.msk.bf16.mxu1 %vm2075_vm1, %v2074_v0  ;;  %1599 = vmatmul.mubr.msk.bf16.vlgmr.msra.gmra.mrb[0].mxu0 %vm620_vm0, %v596_v16 }
  0xcd   : > { %1619 = vmatpush3.bf16.msra.mxu1 %v1766_v31  ;;  %1611 = vmatpush3.bf16.msra.mxu0 %v1767_v32 }
  0xce   : > { %1620 = vmatprep.subr.bf16.mxu1 %v2074_v0  ;;  %1612 = vmatprep.subr.bf16.mxu0 %v2074_v0 }
  0xcf   : > { %1614 = vmatprep.mubr.msk.bf16.mxu0 %vm2075_vm1, %v2074_v0 }
  0xd1   : > { %v778_v17 = vld [vmem:[#allocation3 + $0x8] sm:$0xff]  ;;  %v779_v20 = vld [vmem:[#allocation3 + $0x10] sm:$0xff]  ;;  %1621 = vmatpush3.bf16.msra.mxu1 %v1768_v33  ;;  %1613 = vmatpush3.bf16.msra.mxu0 %v1769_v34 }
  0xd2   : > { %v803_v18 = vld [vmem:[#allocation3 + $0x7] sm:$0xff]  ;;  %784 = vperm.xlu0 %1760, %v778_v17   ;;  %v804_v21 = vld [vmem:[#allocation3 + $0xf] sm:$0xff] }
  0xd3   : > { %v805_v19 = vmul.f32 %v803_v18, %v778_v17  ;;  %v830_v22 = vld [vmem:[#allocation3 + $0x6] sm:$0xff]  ;;  %v806_v23 = vmul.f32 %v804_v21, %v779_v20  ;;  %v831_v24 = vld [vmem:[#allocation3 + $0xe] sm:$0xff] }
  0xd5   : > { %811 = vperm.xlu1 %1761, %v805_v19   ;;  %v832_v25 = vmul.f32 %v830_v22, %v805_v19  ;;  %v833_v26 = vmul.f32 %v831_v24, %v806_v23 }
  0xd6   : > { %789 = vperm.xlu0 %1760, %v779_v20  }
  0xd9   : > { %816 = vperm.xlu1 %1761, %v806_v23   ;;  %v1511_v23 = vld [vmem:[#allocation10] ss:$0 sm:$0xff] }
  0xda   : > { %838 = vperm.xlu0 %1760, %v832_v25  }
  0xdd   : > { %843 = vperm.xlu1 %1761, %v833_v26  }
  0xde   : > { %1062 = vperm.xlu0 %1760, %v1059_v27  }
  0xe1   : > { %1065 = vperm.xlu1 %1761, %v1060_v28  }
 0x151   : > { %v785_v37 = vpop.permute.xlu0 %784 }
 0x154   : > { %v812_v40 = vpop.permute.xlu1 %811 }
 0x155   : > { %v790_v45 = vpop.permute.xlu0 %789 }
 0x158   : > { %v817_v46 = vpop.permute.xlu1 %816 }
 0x159   : > { %v839_v0 = vpop.permute.xlu0 %838 }
 0x15c   : > { %v844_v2 = vpop.permute.xlu1 %843 }
 0x19e   : > { %v740_v36 = vpop.f32.mrb[0].mxu1 }
 0x19f   : > { %v741_v38 = vadd.f32 %v1515_v35, %v740_v36  ;;  %v1608_v39 = vpop.f32.mrb[1].mxu1  ;;  %v658_v24 = vpop.f32.mrb[0].mxu0 }
 0x1a0   : > { %v743_v41 = vpop.f32.mrb[2].mxu1  ;;  %v659_v25 = vadd.f32 %v1511_v23, %v658_v24  ;;  %v1600_v26 = vpop.f32.mrb[1].mxu0 }
 0x1a1   : > { %756 = vst.msk [vmem:[#allocation2 + $0x8] sm:$0xff] %vm620_vm0, %v741_v38  ;;  %v744_v42 = vadd.f32 %v1515_v35, %v743_v41  ;;  %v1609_v43 = vpop.f32.mrb[3].mxu1  ;;  %v768_v48 = vmul.f32 %v1521_v44, %v741_v38  ;;  %v661_v27 = vpop.f32.mrb[2].mxu0 }
 0x1a2   : > { %v667_v28 = vmul.f32 0.044715, %v659_v25  ;;  %v662_v29 = vadd.f32 %v1511_v23, %v661_v27  ;;  %v1601_v30 = vpop.f32.mrb[3].mxu0 }
 0x1a3   : > { %757 = vst.msk [vmem:[#allocation2 + $0x10] sm:$0xff] %vm620_vm0, %v744_v42  ;;  %v769_v51 = vmul.f32 %v1521_v44, %v744_v42  ;;  %v776_v60 = vadd.f32 %v1522_v47, %v768_v48  ;;  %v1015_v48 = vld [vmem:[%s2664_s21] sm:$0x1] }
 0x1a4   : > { %v669_v31 = vmul.f32 %v667_v28, %v659_v25  ;;  %v668_v32 = vmul.f32 0.044715, %v662_v29  ;;  %v666_v43 = vmul.f32 0.5, %v662_v29 }
 0x1a5   : > { %v777_v1 = vadd.f32 %v1522_v47, %v769_v51 }
 0x1a6   : > { %v671_v33 = vmul.f32 %v669_v31, %v659_v25  ;;  %v670_v34 = vmul.f32 %v668_v32, %v662_v29 }
 0x1a8   : > { %v780_v49 = vld [vmem:[#allocation2 + $0x7] sm:$0xff]  ;;  %v673_v35 = vadd.f32 %v671_v33, %v659_v25  ;;  %v672_v36 = vmul.f32 %v670_v34, %v662_v29 }
 0x1a9   : > { %v807_v52 = vld [vmem:[#allocation2 + $0x6] sm:$0xff]  ;;  %v792_v53 = vmul.f32 %v785_v37, %v780_v49  ;;  %v1017_v49 = vand.u32 2147483647, %v1015_v48 }
 0x1aa   : > { %v819_v55 = vmul.f32 %v812_v40, %v807_v52  ;;  %v834_v56 = vld [vmem:[#allocation2 + $0x5] sm:$0xff]  ;;  %v781_v57 = vld [vmem:[#allocation2 + $0xf] sm:$0xff]  ;;  %v675_v37 = vmul.f32 0.7978846, %v673_v35  ;;  %v674_v38 = vadd.f32 %v672_v36, %v662_v29  ;;  %v665_v40 = vmul.f32 0.5, %v659_v25  ;;  %v1063_v35 = vpop.permute.xlu0 %1062  ;;  %v1066_v36 = vpop.permute.xlu1 %1065 }
 0x1ab   : > { %v808_v58 = vld [vmem:[#allocation2 + $0xe] sm:$0xff]  ;;  %v799_v61 = vmul.f32 %v1523_v50, %v792_v53  ;;  %v793_v62 = vmul.f32 %v790_v45, %v781_v57  ;;  %v846_v8 = vmul.f32 %v839_v0, %v834_v56  ;;  %v1532_v52 = vld [vmem:[%s2665_s24] ss:$0 sm:$0xff]  ;;  %vm1067_vm7 = vcmp.eq.s32.totalorder %v1063_v35, 1 }
 0x1ac   : > { %v835_v59 = vld [vmem:[#allocation2 + $0xd] sm:$0xff]  ;;  %v820_v63 = vmul.f32 %v817_v46, %v808_v58  ;;  %v826_v12 = vmul.f32 %v1524_v54, %v819_v55  ;;  %1770 = vtanh.f32 %v675_v37  ;;  %v676_v39 = vmul.f32 0.7978846, %v674_v38 }
 0x1ad   : > { %v801_v9 = vadd.f32 %v799_v61, %v776_v60  ;;  %v800_v10 = vmul.f32 %v1523_v50, %v793_v62  ;;  %v847_v11 = vmul.f32 %v844_v2, %v835_v59  ;;  %v853_v19 = vmul.f32 %v1525_v13, %v846_v8 }
 0x1ae   : > { %v827_v15 = vmul.f32 %v1524_v54, %v820_v63  ;;  %1772 = vtanh.f32 %v676_v39  ;;  %v1018_v50 = vsub.f32 0.0, %v1017_v49  ;;  %vm1068_vm8 = vcmp.eq.s32.totalorder %v1066_v36, 1 }
 0x1af   : > { %v802_v14 = vadd.f32 %v800_v10, %v777_v1  ;;  %v828_v16 = vadd.f32 %v826_v12, %v801_v9  ;;  %v854_v18 = vmul.f32 %v1525_v13, %v847_v11  ;;  %v1026_v9 = vlaneseq }
 0x1b0   : > { %v1019_v51 = vmul.f32 1.442695, %v1018_v50 }
 0x1b1   : > { %v829_v17 = vadd.f32 %v827_v15, %v802_v14  ;;  %v2455_v21 = vadd.f32 %v853_v19, %v828_v16  ;;  %v1016_v14 = vmax.f32 %v1015_v48, 0.0  ;;  %v2469_v16 = vshrl.u32 %v1026_v9, 7  ;;  %v1526_v19 = vld [vmem:[%s2666_s25] ss:$0 sm:$0xff] }
 0x1b2   : > { %1774 = vpow2.f32 %v1019_v51 }
 0x1b3   : > { %v2453_v20 = vadd.f32 %v854_v18, %v829_v17  ;;  %v2472_v18 = vsub.s32 0, %v2469_v16 }
 0x1b5   : > { %v857_v22 = vpack.c.bf16 %v2453_v20, %v2455_v21 }
 0x1b6   : > { %v1771_v41 = vpop.eup %1770 }
 0x1b7   : > { %1615 = vmatmul.mubr.msk.bf16.vlgmr.msra.gmra.mrb[4].mxu0 %vm620_vm0, %v857_v22  ;;  %1623 = vmatmul.mubr.msk.bf16.vlgmr.msra.gmra.mrb[4].mxu1 %vm620_vm0, %v857_v22  ;;  %v679_v42 = vadd.f32 1.0, %v1771_v41 }
 0x1b8   : > { %v1773_v44 = vpop.eup %1772 }
 0x1b9   : > { %v681_v45 = vmul.f32 %v679_v42, %v665_v40  ;;  %v680_v46 = vadd.f32 1.0, %v1773_v44 }
 0x1bb   : > { %1081 = vst.msk [vmem:[#allocation6] sm:$0xff] %vm620_vm0, %v681_v45  ;;  %v682_v47 = vmul.f32 %v680_v46, %v666_v43 }
 0x1bc   : > { %v1775_v53 = vpop.eup %1774 }
 0x1bd   : > { %1082 = vst.msk [vmem:[#allocation6 + $0x8] sm:$0xff] %vm620_vm0, %v682_v47  ;;  %v1021_v62 = vadd.f32 1.0, %v1775_v53 }
 0x28a   : > { %v918_v54 = vpop.f32.mrb[4].mxu0  ;;  %v994_v55 = vpop.f32.mrb[4].mxu1 }
 0x28b   : > { %v995_v56 = vadd.f32 %v1532_v52, %v994_v55  ;;  %v1616_v57 = vpop.f32.mrb[5].mxu0  ;;  %v1624_v58 = vpop.f32.mrb[5].mxu1  ;;  %v919_v24 = vadd.f32 %v1526_v19, %v918_v54 }
 0x28c   : > { %v921_v59 = vpop.f32.mrb[6].mxu0  ;;  %v997_v60 = vpop.f32.mrb[6].mxu1 }
 0x28d   : > { %v1536_v61 = vmul.f32 -1.442695, %v995_v56  ;;  %v998_v63 = vadd.f32 %v1532_v52, %v997_v60  ;;  %v1617_v0 = vpop.f32.mrb[7].mxu0  ;;  %v1625_v1 = vpop.f32.mrb[7].mxu1  ;;  %v922_v28 = vadd.f32 %v1526_v19, %v921_v59  ;;  %v1530_v30 = vmul.f32 -1.442695, %v919_v24 }
 0x28f   : > { %v1537_v2 = vmul.f32 -1.442695, %v998_v63  ;;  %1776 = vpow2.f32 %v1536_v61  ;;  %v1531_v33 = vmul.f32 -1.442695, %v922_v28 }
 0x290   : > { %1778 = vlog2.f32 %v1021_v62 }
 0x291   : > { %1780 = vpow2.f32 %v1537_v2 }
 0x299   : > { %v1777_v8 = vpop.eup %1776 }
 0x29a   : > { %v1779_v10 = vpop.eup %1778  ;;  %v1007_v11 = vadd.f32 1.0, %v1777_v8 }
 0x29b   : > { %v1781_v12 = vpop.eup %1780  ;;  %v1023_v15 = vmul.f32 0.6931472, %v1779_v10 }
 0x29c   : > { %1782 = vrcp.f32 %v1007_v11  ;;  %v1008_v13 = vadd.f32 1.0, %v1781_v12 }
 0x29d   : > { %v1024_v17 = vadd.f32 %v1023_v15, %v1016_v14 }
 0x29e   : > { %1784 = vrcp.f32 %v1008_v13 }
 0x29f   : > { %v1029_v22 = vrot.slane %v1024_v17, %v2472_v18 }
 0x2a6   : > { %v1783_v23 = vpop.eup %1782 }
 0x2a7   : > { %v1013_v25 = vmul.f32 -8.0, %v1783_v23 }
 0x2a8   : > { %v1785_v26 = vpop.eup %1784 }
 0x2a9   : > { %v1031_v27 = vmul.f32 %v1029_v22, %v1013_v25  ;;  %v1014_v29 = vmul.f32 -8.0, %v1785_v26 }
 0x2ab   : > { %v1033_v31 = vmul.f32 1.442695, %v1031_v27  ;;  %v1032_v32 = vmul.f32 %v1029_v22, %v1014_v29 }
 0x2ad   : > { %1786 = vpow2.f32 %v1033_v31  ;;  %v1035_v34 = vmul.f32 1.442695, %v1032_v32 }
 0x2ae   : > { %1788 = vpow2.f32 %v1530_v30 }
 0x2af   : > { %1790 = vpow2.f32 %v1035_v34 }
 0x2b0   : > { %1792 = vpow2.f32 %v1531_v33 }
 0x2b7   : > { %v1787_v37 = vpop.eup %1786 }
 0x2b8   : > { %v1789_v38 = vpop.eup %1788  ;;  %v1039_v39 = vmul.f32 %v1787_v37, %v1787_v37  ;;  %v1071_v40 = vsel %vm1067_vm7, 0.0, %v1787_v37 }
 0x2b9   : > { %v1791_v41 = vpop.eup %1790  ;;  %1073 = vst.msk [vmem:[#allocation4] sm:$0xff] %vm620_vm0, %v1071_v40  ;;  %v931_v46 = vadd.f32 1.0, %v1789_v38 }
 0x2ba   : > { %v1041_v42 = vsub.f32 1.0, %v1039_v39  ;;  %v1040_v43 = vmul.f32 %v1791_v41, %v1791_v41  ;;  %v1072_v44 = vsel %vm1068_vm8, 0.0, %v1791_v41  ;;  %v1793_v45 = vpop.eup %1792 }
 0x2bb   : > { %1074 = vst.msk [vmem:[#allocation4 + $0x8] sm:$0xff] %vm620_vm0, %v1072_v44  ;;  %v932_v49 = vadd.f32 1.0, %v1793_v45 }
 0x2bc   : > { %v1043_v47 = vmax.f32 %v1041_v42, 0.0  ;;  %v1042_v48 = vsub.f32 1.0, %v1040_v43 }
 0x2be   : > { %1794 = vrsqrt.f32 %v1043_v47  ;;  %v1044_v50 = vmax.f32 %v1042_v48, 0.0  ;;  %vm1047_vm9 = vcmp.eq.f32.partialorder %v1043_v47, inf  ;;  %v1050_v54 = vand.u32 2147483648, %v1043_v47 }
 0x2bf   : > { %1796 = vrcp.f32 %v931_v46  ;;  %vm1049_vm10 = vcmp.eq.f32.partialorder %v1043_v47, 0.0 }
 0x2c0   : > { %1798 = vrsqrt.f32 %v1044_v50  ;;  %vm1054_vm11 = vcmp.eq.f32.partialorder %v1044_v50, inf  ;;  %v1057_v62 = vand.u32 2147483648, %v1044_v50  ;;  %vm1056_vm12 = vcmp.eq.f32.partialorder %v1044_v50, 0.0 }
 0x2c1   : > { %1800 = vrcp.f32 %v932_v49 }
 0x2c8   : > { %v1795_v51 = vpop.eup %1794 }
 0x2c9   : > { %v1797_v52 = vpop.eup %1796  ;;  %v1046_v53 = vmul.f32 %v1795_v51, %v1043_v47 }
 0x2ca   : > { %v1799_v55 = vpop.eup %1798  ;;  %v1075_v58 = vmul.f32 %v1797_v52, %v2455_v21  ;;  %v2489_v21 = vmov 0.0  }
 0x2cb   : > { %v1048_v56 = vsel %vm1047_vm9, %v1043_v47, %v1046_v53  ;;  %v1801_v57 = vpop.eup %1800  ;;  %v1053_v60 = vmul.f32 %v1799_v55, %v1044_v50 }
 0x2cc   : > { %v1051_v59 = vsel %vm1049_vm10, %v1050_v54, %v1048_v56  ;;  %v1076_v1 = vmul.f32 %v1801_v57, %v2453_v20 }
 0x2cd   : > { %v1069_v61 = vsel %vm1067_vm7, 1.0, %v1051_v59  ;;  %v1055_v0 = vsel %vm1054_vm11, %v1044_v50, %v1053_v60 }
 0x2ce   : > { %v1077_v63 = vmul.f32 %v1075_v58, %v1069_v61  ;;  %v1058_v2 = vsel %vm1056_vm12, %v1057_v62, %v1055_v0 }
 0x2cf   : > { %v1070_v8 = vsel %vm1068_vm8, 1.0, %v1058_v2 }
 0x2d0   : > { %1079 = vst.msk [vmem:[#allocation5] sm:$0xff] %vm620_vm0, %v1077_v63  ;;  %v1078_v9 = vmul.f32 %v1076_v1, %v1070_v8 }
 0x2d2   : > { %1080 = vst.msk [vmem:[#allocation5 + $0x8] sm:$0xff] %vm620_vm0, %v1078_v9 }
 0x2d3 LB: >> { %v1568_v20 = vcombine.low %v2390_v3, %v2395_v4  ;;  %v2078_v10 = vmov 0.0   ;;  %vm2079_vm13 = vmmov 0   ;;  %v1569_v11 = vcombine.low %v2400_v5, %v2408_v6  ;;  %s2502_s23 = sshll.u32 %s2064_s30, 3  ;;  %s1095_s30 = sadd.s32 1, %s2064_s30   ;;  %s2064_s30 = sphi %s2491_s30, %s1095_s30   ;;  %v2060_v21 = vphi %v2489_v21, %v1210_v21  }
 0x2d4   : >> { %1626 = vmatprep.subr.bf16.mxu0 %v2078_v10  ;;  %1630 = vmatprep.mubr.msk.bf16.mxu0 %vm2079_vm13, %v2078_v10  ;;  %s2505_s17 = scalar_lea.vmem [#allocation4], %s2502_s23  ;;  %s2509_s26 = scalar_lea.vmem [#allocation5], %s2502_s23  ;;  %vm1106_vm14 = vcmp.eq.s32.totalorder %v2469_v16, 0  ;;  %vm1121_vm15 = vcmp.eq.s32.totalorder %v2469_v16, 1  ;;  %vm1136_vm1 = vcmp.eq.s32.totalorder %v2469_v16, 2  ;;  %vm1151_vm2 = vcmp.eq.s32.totalorder %v2469_v16, 3 }
 0x2d5   : >> { %1627 = vmatpush3.bf16.msra.mxu0 %v1568_v20  ;;  %v1101_v12 = vld [vmem:[%s2505_s17] sm:$0x1]  ;;  %v1540_v15 = vld [vmem:[%s2505_s17 + $0x1] sm:$0x1]  ;;  %v1544_v23 = vld [vmem:[%s2505_s17 + $0x2] sm:$0x1]  ;;  %s1282_s20 = scalar_lea.vmem %s582_s15, %s2502_s23 [#allocation18] }
 0x2d6   : >> { %1628 = vmatprep.subr.bf16.mxu0 %v2078_v10  ;;  %v1104_v14 = vmul.f32 %v2060_v21, %v1101_v12  ;;  %v1548_v28 = vld [vmem:[%s2505_s17 + $0x3] sm:$0x1]  ;;  %v1552_v34 = vld [vmem:[%s2505_s17 + $0x4] sm:$0x1]  ;;  %v1556_v40 = vld [vmem:[%s2505_s17 + $0x5] sm:$0x1] }
 0x2d7   : >> { %v1560_v47 = vld [vmem:[%s2505_s17 + $0x6] sm:$0x1]  ;;  %vm1166_vm3 = vcmp.eq.s32.totalorder %v2469_v16, 4  ;;  %vm1181_vm4 = vcmp.eq.s32.totalorder %v2469_v16, 5  ;;  %v1564_v54 = vld [vmem:[%s2505_s17 + $0x7] sm:$0x1] }
 0x2d8   : >> { %vm1196_vm5 = vcmp.eq.s32.totalorder %v2469_v16, 6  ;;  %vm1211_vm6 = vcmp.eq.s32.totalorder %v2469_v16, 7  ;;  %s1098_s9 = scalar_lea.vmem [#allocation6], %s2502_s23  ;;  %p1092_p4 = scmp.ge.s32.totalorder %s1095_s30, 2  }
 0x2d9   : >> { %v1103_v13 = vld [vmem:[%s2509_s26] sm:$0x1]  ;;  %1629 = vmatpush3.bf16.msra.mxu0 %v1569_v11  ;;  %v1542_v19 = vld [vmem:[%s2509_s26 + $0x1] sm:$0x1]  ;;  %v1546_v25 = vld [vmem:[%s2509_s26 + $0x2] sm:$0x1] }
 0x2da   : >> { %v1105_v17 = vadd.f32 %v1104_v14, %v1103_v13  ;;  %v1550_v30 = vld [vmem:[%s2509_s26 + $0x3] sm:$0x1]  ;;  %v1554_v37 = vld [vmem:[%s2509_s26 + $0x4] sm:$0x1]  ;;  %v1558_v44 = vld [vmem:[%s2509_s26 + $0x5] sm:$0x1] }
 0x2db   : >> { %v1562_v50 = vld [vmem:[%s2509_s26 + $0x6] sm:$0x1]  ;;  %v1566_v56 = vld [vmem:[%s2509_s26 + $0x7] sm:$0x1]  ;;  %s2667_s28 = sld [smem:[#allocation29_spill]] (%p1092_p4)  ;;  %s1578_s11 = sshll.u32 (%p1092_p4), %s2184_s22, 8 }
 0x2dc   : >> { %v1119_v22 = vmul.f32 %v1540_v15, %v1105_v17  ;;  %v1112_v27 = vrot.slane %v1105_v17, %v2472_v18  ;;  %v1099_v61 = vld [vmem:[%s1098_s9] sm:$0xff]  ;;  %s2668_s29 = sld [smem:[#allocation36_spill]] (%p1092_p4)  ;;  %s1298_s24 = sshll.u32 (%p1092_p4), %s582_s15, 4  ;;  %s2562_s24 = int_to_ptr.vmem [resolvable:$true] %s1298_s24 }
 0x2dd   : > { %s2566_s18 = scalar_lea.sflag (%p1092_p4), [#allocation9], %s580_s3  ;;  %s1970_s27 = scalar_lea.vmem (%p1092_p4), %s2562_s24, 256 }
 0x2de   : >> { %v1120_v24 = vadd.f32 %v1542_v19, %v1119_v22  ;;  %v1113_v33 = vsel %vm1106_vm14, %v1112_v27, 0.0  ;;  %p1971_p7 = scmp.ne.s32.totalorder (%p1092_p4), %s2562_s24, %s1970_s27  ;;  %s2080_s22 = smov (%p1092_p4), [#allocation18]  }
 0x2df   : > { %s1974_s25 = sshll.u32 (%p1092_p4), %s2080_s22, 4  ;;  %s1975_s25 = int_to_ptr.vmem [resolvable:$false] %s1974_s25 }
 0x2e0   : >> { %v1134_v26 = vmul.f32 %v1544_v23, %v1120_v24  ;;  %v1127_v31 = vrot.slane %v1120_v24, %v2472_v18  ;;  %s1976_s30 = scalar_lea.vmem (%p1092_p4), %s1975_s25, 512  ;;  %p1977_p0 = scmp.lt.s32.totalorder (%p1092_p4), %s2562_s24, %s1975_s25 }
 0x2e1   : > { %p2669_p8 = scmp.ne.s32.totalorder (%p1092_p4), %s2667_s28, 0  ;;  %p1978_p1 = scmp.lt.s32.totalorder (%p1092_p4), %s1976_s30, %s1970_s27 }
 0x2e2   : >> { %v1135_v29 = vadd.f32 %v1546_v25, %v1134_v26  ;;  %v1128_v38 = vsel %vm1121_vm15, %v1127_v31, %v1113_v33  ;;  %s2558_s16 = scalar_lea.hbm (%p1092_p4), %s2668_s29, %s1578_s11 }
 0x2e3   : > { %p1972_p11 = pnand (%p1092_p4), %p1971_p7, %p2669_p8  ;;  %p1979_p6 = por (%p1092_p4), %p1978_p1, %p1977_p0 }
 0x2e4   : >> { %v1149_v32 = vmul.f32 %v1548_v28, %v1135_v29  ;;  %v1142_v36 = vrot.slane %v1135_v29, %v2472_v18 }
 0x2e5   : > { %p1973_p13 = pneg (%p1092_p4), %p1972_p11 }
 0x2e6   : >> { %v1150_v35 = vadd.f32 %v1550_v30, %v1149_v32  ;;  %v1143_v43 = vsel %vm1136_vm1, %v1142_v36, %v1128_v38 }
 0x2e7   : > { %p1980_p5 = pnand (%p1092_p4), %p1979_p6, %p1973_p13 }
 0x2e8   : >> { %v1164_v39 = vmul.f32 %v1552_v34, %v1150_v35  ;;  %v1157_v41 = vrot.slane %v1150_v35, %v2472_v18 }
 0x2ea   : >> { %v1165_v42 = vadd.f32 %v1554_v37, %v1164_v39  ;;  %v1158_v48 = vsel %vm1151_vm2, %v1157_v41, %v1143_v43 }
 0x2ec   : >> { %v1179_v45 = vmul.f32 %v1556_v40, %v1165_v42  ;;  %v1172_v46 = vrot.slane %v1165_v42, %v2472_v18 }
 0x2ee   : >> { %v1180_v49 = vadd.f32 %v1558_v44, %v1179_v45  ;;  %v1173_v53 = vsel %vm1166_vm3, %v1172_v46, %v1158_v48 }
 0x2f0   : >> { %v1187_v51 = vrot.slane %v1180_v49, %v2472_v18  ;;  %v1194_v52 = vmul.f32 %v1560_v47, %v1180_v49 }
 0x2f2   : >> { %v1195_v55 = vadd.f32 %v1562_v50, %v1194_v52  ;;  %v1188_v57 = vsel %vm1181_vm4, %v1187_v51, %v1173_v53 }
 0x2f4   : >> { %v1202_v58 = vrot.slane %v1195_v55, %v2472_v18  ;;  %v1209_v59 = vmul.f32 %v1564_v54, %v1195_v55 }
 0x2f6   : >> { %v1210_v21 = vadd.f32 %v1566_v56, %v1209_v59   ;;  %v1203_v60 = vsel %vm1196_vm5, %v1202_v58, %v1188_v57 }
 0x2f8   : >> { %v1217_v62 = vrot.slane %v1210_v21, %v2472_v18 }
 0x2fa   : >> { %v1218_v63 = vsel %vm1211_vm6, %v1217_v62, %v1203_v60 }
 0x2fb   : >> { %v1219_v0 = vmul.f32 %v1218_v63, %v1099_v61 }
 0x2fd   : >> { %v1220_v1 = vpack.c.bf16 %v1219_v0, %v1219_v0 }
 0x2ff   : >> { %1631 = vmatmul.mubr.msk.bf16.vlgmr.msra.gmra.mrb[0].mxu0 %vm620_vm0, %v1220_v1 }
 0x3cf   : > { %1094 = sbr.rel (!%p1092_p4) target bundleno = 723 (0x2d3), region = 168 }
 0x3d2   : >> { %v1276_v2 = vpop.f32.mrb[0].mxu0 }
 0x3d3   : >> { %v1277_v8 = vadd.f32 %v2413_v7, %v1276_v2  ;;  %v1632_v9 = vpop.f32.mrb[1].mxu0 }
 0x3d4   : >> { %v1279_v20 = vpop.f32.mrb[2].mxu0 }
 0x3d5   : >> { %1283 = vst.msk [vmem:[%s1282_s20] sm:$0xff] %vm620_vm0, %v1277_v8  ;;  %v1633_v10 = vpop.f32.mrb[3].mxu0 }
 0x3d6   : > { %1983 = shalt.err (!%p1980_p5)
}
 0x3d7   : > { %s1984_s3 = scalar_lea.hbm %s2558_s16, 256  ;;  %s1988_s23 = scalar_lea.hbm %s2668_s29, 512 }
 0x3d8   : > { %p1985_p9 = scmp.ne.s32.totalorder %s2558_s16, %s1984_s3  ;;  %p1989_p2 = scmp.lt.u32.totalorder %s2558_s16, %s2668_s29 }
 0x3d9   : > { %p1990_p3 = scmp.lt.u32.totalorder %s1988_s23, %s1984_s3  ;;  %p1992_p7 = scmp.lt.u32.totalorder %s1984_s3, %s2558_s16 }
 0x3da   : > { %p1986_p12 = pnand %p1985_p9, %p2669_p8 }
 0x3db   : > { %p1991_p4 = por %p1990_p3, %p1989_p2 }
 0x3dc   : > { %p1987_p10 = pneg %p1986_p12 }
 0x3dd   : > { %p1993_p11 = por %p1992_p7, %p1991_p4 }
 0x3df   : > { %p1994_p13 = pnand %p1993_p11, %p1987_p10 }
 0x3e1   : > { %1997 = shalt.err (!%p1994_p13)
}
 0x3e2   : > { %s2081_s9 = smov 128   ;;  %s2082_s20 = smov 8  }
 0x3e3   : > { %1658 = dma.vmem_to_hbm [thread:$0]  (%p2669_p8), %s2562_s24, 256, %s2558_s16, %s2566_s18, %s2081_s9, %s2081_s9, %s2082_s20  }
 0x3e4 PF: > { %s2670_s11 = sld [smem:[#allocation26_spill]]  ;;  %s2671_s12 = sld [smem:[#allocation24_spill]] }
 0x3e5   : > { %s2672_s21 = sld [smem:[#allocation30_spill]] }
 0x3ea   : > { %p1695_p0 = scmp.ge.s32.totalorder %s2670_s11, 2  ;;  %s1313_s27 = sand.u32 1, %s2671_s12  }
 0x3eb   : > { %p2673_p1 = scmp.ne.s32.totalorder %s2672_s21, 0  ;;  %s1314_s22 = scalar_lea.sflag [#allocation9], %s1313_s27 }
 0x3ed   : > { %p1680_p6 = pnand %p1695_p0, %p2673_p1 }
 0x3ef   : > { %2039 = dma.done.wait (!%p1680_p6), %s1314_s22, 256  }
 0x3f0   : > { %2041 = vsyncadd (!%p1680_p6), %s1314_s22, 4294967040  ;;  %s2674_s21 = sld [smem:[#allocation27_spill]]  ;;  %s2675_s25 = sld [smem:[#allocation25_spill]] }
 0x3f1   : > { %s2676_s20 = sld [smem:[#allocation28_spill]]  ;;  %s2677_s18 = smov %s2048_s19 }
 0x3f6   : > { %p29_p5 = scmp.ge.s32.totalorder %s2674_s21, 4   ;;  %s2678_s19 = smov %s2675_s25 }
 0x3f8   :  { %31 = sbr.rel (!%p29_p5) target bundleno = 14 (0xe), region = 179 }
 0x3ff   :  { %1319 = vsyncpa [#allocation8], 1 }
 0x400   :  { %1321 = vsyncpa [#allocation8 + $0x1], 1 }
 0x401   :  { %1322 = vsyncpa [#allocation11], 1 }
 0x402   :  { %1323 = vsyncpa [#allocation14], 1 }
 0x403   :  { %1324 = vsyncpa [#allocation17], 1 }
 0x404   :  { %1325 = vsyncpa [#allocation9], 1 }
 0x405   :  { %1327 = vsyncpa [#allocation9 + $0x1], 1 }

</bundles_post_ra>
